<compile_context>
chip_gen: v5e
topology: v5e:2x2
jax: 0.10.0
libtpu: 0.0.40
codegen_flags: <defaults>
</compile_context>

<pallas_src>
import functools

import jax
import jax.numpy as jnp
from jax.experimental import pallas as pl
from jax.experimental.pallas import tpu as pltpu


def _round_up(x, m):
    return ((x + m - 1) // m) * m


def _sepconv_kernel(x_ref, xh_ref, wdw_ref, bdw_ref, wpw_ref, bpw_ref, o_ref,
                    xbuf_ref, *, K, stride, dilation, tile_h, tile_in, halo_b,
                    W_out, C_in, C_out, use_mxu):
    """One (image, row-tile) step: depthwise KxK + bias -> ReLU -> 1x1 conv + bias.

    Refs (batch dim squeezed; CHW layout -> W on lanes, H on sublanes):
      x_ref   : (C_in, tile_in, W_p)          main row band of the zero-padded input
      xh_ref  : (C_in, halo_b, W_p)           following rows (halo for the K-tap window)
      wdw_ref : (C_in, K*K)        SMEM       depthwise weights, tap index = ki*K + kj
      bdw_ref : (C_in,)            SMEM       depthwise bias
      wpw_ref : (C_out, C_in)      SMEM/VMEM  pointwise weight
      bpw_ref : (C_out,)/(C_out,1) SMEM/VMEM  pointwise bias
      o_ref   : (C_out, tile_h, W_out)
      xbuf_ref: (C_in, tile_in + halo_b, W_p) VMEM scratch (main ++ halo rows)
    """
    # Stitch main block + halo rows into one contiguous row band (both row counts are
    # multiples of 8, so this is a sublane-aligned VMEM copy).
    xbuf_ref[:, :tile_in, :] = x_ref[...]
    xbuf_ref[:, tile_in:, :] = xh_ref[...]

    def patch(c, ki, kj):
        h0 = ki * dilation
        w0 = kj * dilation
        if stride == 1:
            p = xbuf_ref[c, pl.ds(h0, tile_h), pl.ds(w0, W_out)]
        else:
            # TODO(synk): for stride>1 fold the stride into the input DMA instead of a
            # strided lane/sublane read (known-fragile/expensive lowering).
            p = xbuf_ref[c, pl.ds(h0, tile_h, stride), pl.ds(w0, W_out, stride)]
        return p.astype(jnp.float32)

    # --- depthwise conv + bias + ReLU: one full-width (tile_h, W_out) slab/channel ---
    acts = []
    for c in range(C_in):
        taps = [wdw_ref[c, t] for t in range(K * K)]   # hoisted scalar loads (SMEM)
        a = None
        for ki in range(K):
            for kj in range(K):
                term = patch(c, ki, kj) * taps[ki * K + kj]
                a = term if a is None else a + term
        acts.append(jnp.maximum(a + bdw_ref[c], 0.0))

    # --- pointwise 1x1 conv + bias ---------------------------------------------------
    if use_mxu:
        # Large channel counts: one MXU matmul (C_out, C_in) @ (C_in, H*W).
        act2 = jnp.stack(acts, axis=0).reshape(C_in, tile_h * W_out)
        out2 = jnp.dot(wpw_ref[...].astype(jnp.float32), act2,
                       preferred_element_type=jnp.float32)
        out2 = out2 + bpw_ref[...].astype(jnp.float32)          # (C_out, 1) broadcast
        o_ref[...] = out2.reshape(C_out, tile_h, W_out).astype(o_ref.dtype)
    else:
        # Small channel counts: the MXU would be <1% filled -> per-channel VPU MACs.
        for co in range(C_out):
            acc = acts[0] * wpw_ref[co, 0]
            for c in range(1, C_in):
                acc = acc + acts[c] * wpw_ref[co, c]
            o_ref[co] = (acc + bpw_ref[co]).astype(o_ref.dtype)


def _pick_tile_h(H_out, W_p, W_out, C_in, C_out, stride, halo_b, itemsize):
    """Largest row tile (multiple of halo_b) whose per-step VMEM fits this chip."""
    try:
        vmem_cap = pltpu.get_tpu_info().vmem_capacity_bytes
    except Exception:
        vmem_cap = 64 * 1024 * 1024          # v7x per-TC VMEM (smallest current gen)
    budget = int(vmem_cap * 0.7)             # headroom for double-buffering/scratch

    def step_bytes(th):
        t_in = th * stride
        in_blk = C_in * t_in * W_p * itemsize        # main input block
        halo_blk = C_in * halo_b * W_p * itemsize    # halo block
        out_blk = C_out * th * W_out * itemsize      # output block
        stitch = C_in * (t_in + halo_b) * W_p * itemsize   # VMEM scratch copy
        live_f32 = (C_in + C_out + 2) * th * W_out * 4     # act slabs + accumulators
        return 2 * (in_blk + halo_blk + out_blk) + stitch + live_f32

    th = _round_up(min(max(H_out, 1), 512), halo_b)
    while th > halo_b and step_bytes(th) > budget:
        th -= halo_b
    return th, step_bytes(th), vmem_cap


def sep_conv2d(x, w_dw, b_dw, w_pw, b_pw, *, kernel_size, stride=1, padding=0,
               dilation=1):
    """SepConv2d forward. x: (B, C_in, H, W) NCHW -> (B, C_out, H_out, W_out) NCHW."""
    B, C_in, H, W = x.shape
    K = kernel_size
    C_out = w_pw.shape[0]
    H_out = (H + 2 * padding - dilation * (K - 1) - 1) // stride + 1
    W_out = (W + 2 * padding - dilation * (K - 1) - 1) // stride + 1
    W_p = W + 2 * padding

    # Rows of the next tile needed by the K-tap window, rounded to a sublane tile.
    halo = max(dilation * (K - 1) + 1 - stride, 1)
    HALO_B = _round_up(halo, 8)

    itemsize = jnp.dtype(x.dtype).itemsize
    TILE_H, step_bytes, vmem_cap = _pick_tile_h(
        H_out, W_p, W_out, C_in, C_out, stride, HALO_B, itemsize)
    TILE_IN = TILE_H * stride                      # multiple of HALO_B (>= 8)
    n_tiles = pl.cdiv(H_out, TILE_H)
    halo_per_tile = TILE_IN // HALO_B

    # Spatial zero-pad only (NCHW kept end-to-end: no transposes). Extra bottom rows
    # guarantee every (main + halo) block DMA is in-bounds.
    H_pad = max(H + 2 * padding, n_tiles * TILE_IN + HALO_B)
    x_pad = jnp.pad(x, ((0, 0), (0, 0),
                        (padding, H_pad - H - padding),
                        (padding, padding)))
    # TODO(synk): fold this zero-pad into the kernel's input DMA (zero-filled VMEM slab
    # + interior-only copy) to remove one extra HBM pass over the activations.

    use_mxu = (C_in * C_out) >= 2048
    if use_mxu:
        w_pw_arg = w_pw
        b_pw_arg = b_pw.reshape(C_out, 1)
        pw_specs = [pl.BlockSpec((C_out, C_in), lambda b, t: (0, 0)),
                    pl.BlockSpec((C_out, 1), lambda b, t: (0, 0))]
    else:
        w_pw_arg = w_pw
        b_pw_arg = b_pw
        pw_specs = [pl.BlockSpec(memory_space=pltpu.MemorySpace.SMEM),
                    pl.BlockSpec(memory_space=pltpu.MemorySpace.SMEM)]

    kernel = functools.partial(
        _sepconv_kernel, K=K, stride=stride, dilation=dilation, tile_h=TILE_H,
        tile_in=TILE_IN, halo_b=HALO_B, W_out=W_out, C_in=C_in, C_out=C_out,
        use_mxu=use_mxu)

    flops = 2 * B * H_out * W_out * C_in * (K * K + C_out)
    bytes_accessed = itemsize * (B * C_in * H_pad * W_p
                                 + B * C_out * H_out * W_out
                                 + C_in * (K * K + 1) + C_out * (C_in + 1))
    vmem_limit = int(min(0.9 * vmem_cap, max(32 * 1024 * 1024, 1.3 * step_bytes)))

    y = pl.pallas_call(
        kernel,
        out_shape=jax.ShapeDtypeStruct((B, C_out, H_out, W_out), x.dtype),
        grid_spec=pltpu.PrefetchScalarGridSpec(
            num_scalar_prefetch=0,
            grid=(B, n_tiles),                       # image x row-tile
            in_specs=[
                pl.BlockSpec((None, C_in, TILE_IN, W_p),
                             lambda b, t: (b, 0, t, 0)),                     # main band
                pl.BlockSpec((None, C_in, HALO_B, W_p),
                             lambda b, t: (b, 0, (t + 1) * halo_per_tile, 0)),  # halo
                pl.BlockSpec(memory_space=pltpu.MemorySpace.SMEM),           # w_dw
                pl.BlockSpec(memory_space=pltpu.MemorySpace.SMEM),           # b_dw
                pw_specs[0],                                                 # w_pw
                pw_specs[1],                                                 # b_pw
            ],
            out_specs=pl.BlockSpec((None, C_out, TILE_H, W_out),
                                   lambda b, t: (b, 0, t, 0)),
            scratch_shapes=[pltpu.VMEM((C_in, TILE_IN + HALO_B, W_p), x.dtype)],
        ),
        compiler_params=pltpu.CompilerParams(
            dimension_semantics=("parallel", "parallel"),
            vmem_limit_bytes=vmem_limit,
        ),
        cost_estimate=pl.CostEstimate(flops=flops, transcendentals=0,
                                      bytes_accessed=bytes_accessed),
    )(x_pad, x_pad, w_dw, b_dw, w_pw_arg, b_pw_arg)

    return y


def prepare_params(w_dw_torch, b_dw_torch, w_pw_torch, b_pw_torch):
    """One-time re-layout of PyTorch Conv2d weights into kernel-friendly shapes."""
    C_in, _, K, _ = w_dw_torch.shape
    C_out = w_pw_torch.shape[0]
    w_dw = w_dw_torch.reshape(C_in, K * K).astype(jnp.float32)   # tap = ki*K + kj
    b_dw = b_dw_torch.reshape(C_in).astype(jnp.float32)
    w_pw = w_pw_torch.reshape(C_out, C_in).astype(jnp.float32)
    b_pw = b_pw_torch.reshape(C_out).astype(jnp.float32)
    return w_dw, b_dw, w_pw, b_pw


def _reference(x, w_dw_torch, b_dw_torch, w_pw_torch, b_pw_torch, *,
               stride, padding, dilation):
    """Plain-JAX reference matching torch SepConv2d.forward."""
    C_in = x.shape[1]
    y = jax.lax.conv_general_dilated(
        x, w_dw_torch, window_strides=(stride, stride),
        padding=((padding, padding), (padding, padding)),
        rhs_dilation=(dilation, dilation),
        dimension_numbers=("NCHW", "OIHW", "NCHW"),
        feature_group_count=C_in,
        precision=jax.lax.Precision.HIGHEST)
    y = y + b_dw_torch[None, :, None, None]
    y = jnp.maximum(y, 0.0)
    y = jax.lax.conv_general_dilated(
        y, w_pw_torch, window_strides=(1, 1), padding="VALID",
        dimension_numbers=("NCHW", "OIHW", "NCHW"),
        precision=jax.lax.Precision.HIGHEST)
    return y + b_pw_torch[None, :, None, None]


if __name__ == "__main__":
    # SepConv2d(in_channels=4, out_channels=8, kernel_size=3, stride=1, padding=1)
    B, C_in, H, W = 2, 4, 16, 16
    C_out, K, stride, padding, dilation = 8, 3, 1, 1, 1

    key = jax.random.PRNGKey(0)
    kx, k1, k2, k3, k4 = jax.random.split(key, 5)
    x = jax.random.normal(kx, (B, C_in, H, W), dtype=jnp.float32)
    w_dw_torch = jax.random.normal(k1, (C_in, 1, K, K), dtype=jnp.float32) * 0.2
    b_dw_torch = jax.random.normal(k2, (C_in,), dtype=jnp.float32) * 0.1
    w_pw_torch = jax.random.normal(k3, (C_out, C_in, 1, 1), dtype=jnp.float32) * 0.2
    b_pw_torch = jax.random.normal(k4, (C_out,), dtype=jnp.float32) * 0.1

    # Weights laid out once, outside the forward.
    w_dw, b_dw, w_pw, b_pw = prepare_params(w_dw_torch, b_dw_torch,
                                            w_pw_torch, b_pw_torch)

    fwd = jax.jit(functools.partial(sep_conv2d, kernel_size=K, stride=stride,
                                    padding=padding, dilation=dilation))
    y = fwd(x, w_dw, b_dw, w_pw, b_pw)
    jax.block_until_ready(y)

    y_ref = _reference(x, w_dw_torch, b_dw_torch, w_pw_torch, b_pw_torch,
                       stride=stride, padding=padding, dilation=dilation)
    assert y.shape == (B, C_out, H, W), y.shape
    assert jnp.allclose(y, y_ref, atol=1e-3, rtol=1e-3), \
        float(jnp.max(jnp.abs(y - y_ref)))
    print("KERNEL_OK")
</pallas_src>

<mosaic_0001>
module attributes {stable_mosaic.version = 11 : i64} {
  func.func @_sepconv_kernel(%arg0: i32, %arg1: i32, %arg2: memref<1x4x16x18xf32, #tpu.memory_space<vmem>>, %arg3: memref<1x4x8x18xf32, #tpu.memory_space<vmem>>, %arg4: memref<4x9xf32, #tpu.memory_space<smem>>, %arg5: memref<4xf32, #tpu.memory_space<smem>>, %arg6: memref<8x4xf32, #tpu.memory_space<smem>>, %arg7: memref<8xf32, #tpu.memory_space<smem>>, %arg8: memref<1x8x16x16xf32, #tpu.memory_space<vmem>>, %arg9: memref<4x24x18xf32, #tpu.memory_space<vmem>>) attributes {dimension_semantics = [#tpu.dimension_semantics<parallel>, #tpu.dimension_semantics<parallel>], iteration_bounds = array<i64: 2, 1>, scalar_prefetch = 0 : i64, scratch_operands = 1 : i64, tpu.core_type = #tpu.core_type<tc>, window_params = [{transform_indices = @transform_0, window_bounds = array<i64: 1, 4, 16, 18>}, {transform_indices = @transform_1, window_bounds = array<i64: 1, 4, 8, 18>}, {transform_indices = @transform_2, window_bounds = array<i64: 4, 9>}, {transform_indices = @transform_3, window_bounds = array<i64: 4>}, {transform_indices = @transform_4, window_bounds = array<i64: 8, 4>}, {transform_indices = @transform_5, window_bounds = array<i64: 8>}, {transform_indices = @transform_6, window_bounds = array<i64: 1, 8, 16, 16>}]} {
    %c0 = arith.constant 0 : index
    %c0_0 = arith.constant 0 : index
    %c0_1 = arith.constant 0 : index
    %c0_2 = arith.constant 0 : index
    %0 = vector.load %arg2[%c0, %c0_0, %c0_1, %c0_2] : memref<1x4x16x18xf32, #tpu.memory_space<vmem>>, vector<1x4x16x18xf32>
    %1 = vector.shape_cast %0 : vector<1x4x16x18xf32> to vector<4x16x18xf32>
    %c0_3 = arith.constant 0 : index
    %c0_4 = arith.constant 0 : index
    %c0_5 = arith.constant 0 : index
    %2 = vector.load %arg9[%c0_3, %c0_4, %c0_5] : memref<4x24x18xf32, #tpu.memory_space<vmem>>, vector<4x16x18xf32>
    tpu.vector_store %arg9[%c0_3, %c0_4, %c0_5], %1 {strides = array<i32>} : memref<4x24x18xf32, #tpu.memory_space<vmem>>, vector<4x16x18xf32>,
    %c0_6 = arith.constant 0 : index
    %c0_7 = arith.constant 0 : index
    %c0_8 = arith.constant 0 : index
    %c0_9 = arith.constant 0 : index
    %3 = vector.load %arg3[%c0_6, %c0_7, %c0_8, %c0_9] : memref<1x4x8x18xf32, #tpu.memory_space<vmem>>, vector<1x4x8x18xf32>
    %4 = vector.shape_cast %3 : vector<1x4x8x18xf32> to vector<4x8x18xf32>
    %c0_10 = arith.constant 0 : index
    %c16 = arith.constant 16 : index
    %c0_11 = arith.constant 0 : index
    %5 = vector.load %arg9[%c0_10, %c16, %c0_11] : memref<4x24x18xf32, #tpu.memory_space<vmem>>, vector<4x8x18xf32>
    tpu.vector_store %arg9[%c0_10, %c16, %c0_11], %4 {strides = array<i32>} : memref<4x24x18xf32, #tpu.memory_space<vmem>>, vector<4x8x18xf32>,
    %c0_12 = arith.constant 0 : index
    %c0_13 = arith.constant 0 : index
    %6 = memref.load %arg4[%c0_12, %c0_13] : memref<4x9xf32, #tpu.memory_space<smem>>
    %c0_14 = arith.constant 0 : index
    %c1 = arith.constant 1 : index
    %7 = memref.load %arg4[%c0_14, %c1] : memref<4x9xf32, #tpu.memory_space<smem>>
    %c0_15 = arith.constant 0 : index
    %c2 = arith.constant 2 : index
    %8 = memref.load %arg4[%c0_15, %c2] : memref<4x9xf32, #tpu.memory_space<smem>>
    %c0_16 = arith.constant 0 : index
    %c3 = arith.constant 3 : index
    %9 = memref.load %arg4[%c0_16, %c3] : memref<4x9xf32, #tpu.memory_space<smem>>
    %c0_17 = arith.constant 0 : index
    %c4 = arith.constant 4 : index
    %10 = memref.load %arg4[%c0_17, %c4] : memref<4x9xf32, #tpu.memory_space<smem>>
    %c0_18 = arith.constant 0 : index
    %c5 = arith.constant 5 : index
    %11 = memref.load %arg4[%c0_18, %c5] : memref<4x9xf32, #tpu.memory_space<smem>>
    %c0_19 = arith.constant 0 : index
    %c6 = arith.constant 6 : index
    %12 = memref.load %arg4[%c0_19, %c6] : memref<4x9xf32, #tpu.memory_space<smem>>
    %c0_20 = arith.constant 0 : index
    %c7 = arith.constant 7 : index
    %13 = memref.load %arg4[%c0_20, %c7] : memref<4x9xf32, #tpu.memory_space<smem>>
    %c0_21 = arith.constant 0 : index
    %c8 = arith.constant 8 : index
    %14 = memref.load %arg4[%c0_21, %c8] : memref<4x9xf32, #tpu.memory_space<smem>>
    %c0_22 = arith.constant 0 : index
    %c0_23 = arith.constant 0 : index
    %c0_24 = arith.constant 0 : index
    %15 = vector.load %arg9[%c0_22, %c0_23, %c0_24] : memref<4x24x18xf32, #tpu.memory_space<vmem>>, vector<1x16x16xf32>
    %16 = vector.shape_cast %15 : vector<1x16x16xf32> to vector<16x16xf32>
    %17 = vector.broadcast %6 : f32 to vector<16x16xf32>
    %18 = arith.mulf %16, %17 : vector<16x16xf32>
    %c0_25 = arith.constant 0 : index
    %c0_26 = arith.constant 0 : index
    %c1_27 = arith.constant 1 : index
    %19 = vector.load %arg9[%c0_25, %c0_26, %c1_27] : memref<4x24x18xf32, #tpu.memory_space<vmem>>, vector<1x16x16xf32>
    %20 = vector.shape_cast %19 : vector<1x16x16xf32> to vector<16x16xf32>
    %21 = vector.broadcast %7 : f32 to vector<16x16xf32>
    %22 = arith.mulf %20, %21 : vector<16x16xf32>
    %23 = arith.addf %18, %22 : vector<16x16xf32>
    %c0_28 = arith.constant 0 : index
    %c0_29 = arith.constant 0 : index
    %c2_30 = arith.constant 2 : index
    %24 = vector.load %arg9[%c0_28, %c0_29, %c2_30] : memref<4x24x18xf32, #tpu.memory_space<vmem>>, vector<1x16x16xf32>
    %25 = vector.shape_cast %24 : vector<1x16x16xf32> to vector<16x16xf32>
    %26 = vector.broadcast %8 : f32 to vector<16x16xf32>
    %27 = arith.mulf %25, %26 : vector<16x16xf32>
    %28 = arith.addf %23, %27 : vector<16x16xf32>
    %c0_31 = arith.constant 0 : index
    %c1_32 = arith.constant 1 : index
    %c0_33 = arith.constant 0 : index
    %29 = vector.load %arg9[%c0_31, %c1_32, %c0_33] : memref<4x24x18xf32, #tpu.memory_space<vmem>>, vector<1x16x16xf32>
    %30 = vector.shape_cast %29 : vector<1x16x16xf32> to vector<16x16xf32>
    %31 = vector.broadcast %9 : f32 to vector<16x16xf32>
    %32 = arith.mulf %30, %31 : vector<16x16xf32>
    %33 = arith.addf %28, %32 : vector<16x16xf32>
    %c0_34 = arith.constant 0 : index
    %c1_35 = arith.constant 1 : index
    %c1_36 = arith.constant 1 : index
    %34 = vector.load %arg9[%c0_34, %c1_35, %c1_36] : memref<4x24x18xf32, #tpu.memory_space<vmem>>, vector<1x16x16xf32>
    %35 = vector.shape_cast %34 : vector<1x16x16xf32> to vector<16x16xf32>
    %36 = vector.broadcast %10 : f32 to vector<16x16xf32>
    %37 = arith.mulf %35, %36 : vector<16x16xf32>
    %38 = arith.addf %33, %37 : vector<16x16xf32>
    %c0_37 = arith.constant 0 : index
    %c1_38 = arith.constant 1 : index
    %c2_39 = arith.constant 2 : index
    %39 = vector.load %arg9[%c0_37, %c1_38, %c2_39] : memref<4x24x18xf32, #tpu.memory_space<vmem>>, vector<1x16x16xf32>
    %40 = vector.shape_cast %39 : vector<1x16x16xf32> to vector<16x16xf32>
    %41 = vector.broadcast %11 : f32 to vector<16x16xf32>
    %42 = arith.mulf %40, %41 : vector<16x16xf32>
    %43 = arith.addf %38, %42 : vector<16x16xf32>
    %c0_40 = arith.constant 0 : index
    %c2_41 = arith.constant 2 : index
    %c0_42 = arith.constant 0 : index
    %44 = vector.load %arg9[%c0_40, %c2_41, %c0_42] : memref<4x24x18xf32, #tpu.memory_space<vmem>>, vector<1x16x16xf32>
    %45 = vector.shape_cast %44 : vector<1x16x16xf32> to vector<16x16xf32>
    %46 = vector.broadcast %12 : f32 to vector<16x16xf32>
    %47 = arith.mulf %45, %46 : vector<16x16xf32>
    %48 = arith.addf %43, %47 : vector<16x16xf32>
    %c0_43 = arith.constant 0 : index
    %c2_44 = arith.constant 2 : index
    %c1_45 = arith.constant 1 : index
    %49 = vector.load %arg9[%c0_43, %c2_44, %c1_45] : memref<4x24x18xf32, #tpu.memory_space<vmem>>, vector<1x16x16xf32>
    %50 = vector.shape_cast %49 : vector<1x16x16xf32> to vector<16x16xf32>
    %51 = vector.broadcast %13 : f32 to vector<16x16xf32>
    %52 = arith.mulf %50, %51 : vector<16x16xf32>
    %53 = arith.addf %48, %52 : vector<16x16xf32>
    %c0_46 = arith.constant 0 : index
    %c2_47 = arith.constant 2 : index
    %c2_48 = arith.constant 2 : index
    %54 = vector.load %arg9[%c0_46, %c2_47, %c2_48] : memref<4x24x18xf32, #tpu.memory_space<vmem>>, vector<1x16x16xf32>
    %55 = vector.shape_cast %54 : vector<1x16x16xf32> to vector<16x16xf32>
    %56 = vector.broadcast %14 : f32 to vector<16x16xf32>
    %57 = arith.mulf %55, %56 : vector<16x16xf32>
    %58 = arith.addf %53, %57 : vector<16x16xf32>
    %c0_49 = arith.constant 0 : index
    %59 = memref.load %arg5[%c0_49] : memref<4xf32, #tpu.memory_space<smem>>
    %60 = vector.broadcast %59 : f32 to vector<16x16xf32>
    %61 = arith.addf %58, %60 : vector<16x16xf32>
    %cst = arith.constant 0.000000e+00 : f32
    %62 = vector.broadcast %cst : f32 to vector<16x16xf32>
    %63 = arith.maximumf %61, %62 : vector<16x16xf32>
    %c1_50 = arith.constant 1 : index
    %c0_51 = arith.constant 0 : index
    %64 = memref.load %arg4[%c1_50, %c0_51] : memref<4x9xf32, #tpu.memory_space<smem>>
    %c1_52 = arith.constant 1 : index
    %c1_53 = arith.constant 1 : index
    %65 = memref.load %arg4[%c1_52, %c1_53] : memref<4x9xf32, #tpu.memory_space<smem>>
    %c1_54 = arith.constant 1 : index
    %c2_55 = arith.constant 2 : index
    %66 = memref.load %arg4[%c1_54, %c2_55] : memref<4x9xf32, #tpu.memory_space<smem>>
    %c1_56 = arith.constant 1 : index
    %c3_57 = arith.constant 3 : index
    %67 = memref.load %arg4[%c1_56, %c3_57] : memref<4x9xf32, #tpu.memory_space<smem>>
    %c1_58 = arith.constant 1 : index
    %c4_59 = arith.constant 4 : index
    %68 = memref.load %arg4[%c1_58, %c4_59] : memref<4x9xf32, #tpu.memory_space<smem>>
    %c1_60 = arith.constant 1 : index
    %c5_61 = arith.constant 5 : index
    %69 = memref.load %arg4[%c1_60, %c5_61] : memref<4x9xf32, #tpu.memory_space<smem>>
    %c1_62 = arith.constant 1 : index
    %c6_63 = arith.constant 6 : index
    %70 = memref.load %arg4[%c1_62, %c6_63] : memref<4x9xf32, #tpu.memory_space<smem>>
    %c1_64 = arith.constant 1 : index
    %c7_65 = arith.constant 7 : index
    %71 = memref.load %arg4[%c1_64, %c7_65] : memref<4x9xf32, #tpu.memory_space<smem>>
    %c1_66 = arith.constant 1 : index
    %c8_67 = arith.constant 8 : index
    %72 = memref.load %arg4[%c1_66, %c8_67] : memref<4x9xf32, #tpu.memory_space<smem>>
    %c1_68 = arith.constant 1 : index
    %c0_69 = arith.constant 0 : index
    %c0_70 = arith.constant 0 : index
    %73 = vector.load %arg9[%c1_68, %c0_69, %c0_70] : memref<4x24x18xf32, #tpu.memory_space<vmem>>, vector<1x16x16xf32>
    %74 = vector.shape_cast %73 : vector<1x16x16xf32> to vector<16x16xf32>
    %75 = vector.broadcast %64 : f32 to vector<16x16xf32>
    %76 = arith.mulf %74, %75 : vector<16x16xf32>
    %c1_71 = arith.constant 1 : index
    %c0_72 = arith.constant 0 : index
    %c1_73 = arith.constant 1 : index
    %77 = vector.load %arg9[%c1_71, %c0_72, %c1_73] : memref<4x24x18xf32, #tpu.memory_space<vmem>>, vector<1x16x16xf32>
    %78 = vector.shape_cast %77 : vector<1x16x16xf32> to vector<16x16xf32>
    %79 = vector.broadcast %65 : f32 to vector<16x16xf32>
    %80 = arith.mulf %78, %79 : vector<16x16xf32>
    %81 = arith.addf %76, %80 : vector<16x16xf32>
    %c1_74 = arith.constant 1 : index
    %c0_75 = arith.constant 0 : index
    %c2_76 = arith.constant 2 : index
    %82 = vector.load %arg9[%c1_74, %c0_75, %c2_76] : memref<4x24x18xf32, #tpu.memory_space<vmem>>, vector<1x16x16xf32>
    %83 = vector.shape_cast %82 : vector<1x16x16xf32> to vector<16x16xf32>
    %84 = vector.broadcast %66 : f32 to vector<16x16xf32>
    %85 = arith.mulf %83, %84 : vector<16x16xf32>
    %86 = arith.addf %81, %85 : vector<16x16xf32>
    %c1_77 = arith.constant 1 : index
    %c1_78 = arith.constant 1 : index
    %c0_79 = arith.constant 0 : index
    %87 = vector.load %arg9[%c1_77, %c1_78, %c0_79] : memref<4x24x18xf32, #tpu.memory_space<vmem>>, vector<1x16x16xf32>
    %88 = vector.shape_cast %87 : vector<1x16x16xf32> to vector<16x16xf32>
    %89 = vector.broadcast %67 : f32 to vector<16x16xf32>
    %90 = arith.mulf %88, %89 : vector<16x16xf32>
    %91 = arith.addf %86, %90 : vector<16x16xf32>
    %c1_80 = arith.constant 1 : index
    %c1_81 = arith.constant 1 : index
    %c1_82 = arith.constant 1 : index
    %92 = vector.load %arg9[%c1_80, %c1_81, %c1_82] : memref<4x24x18xf32, #tpu.memory_space<vmem>>, vector<1x16x16xf32>
    %93 = vector.shape_cast %92 : vector<1x16x16xf32> to vector<16x16xf32>
    %94 = vector.broadcast %68 : f32 to vector<16x16xf32>
    %95 = arith.mulf %93, %94 : vector<16x16xf32>
    %96 = arith.addf %91, %95 : vector<16x16xf32>
    %c1_83 = arith.constant 1 : index
    %c1_84 = arith.constant 1 : index
    %c2_85 = arith.constant 2 : index
    %97 = vector.load %arg9[%c1_83, %c1_84, %c2_85] : memref<4x24x18xf32, #tpu.memory_space<vmem>>, vector<1x16x16xf32>
    %98 = vector.shape_cast %97 : vector<1x16x16xf32> to vector<16x16xf32>
    %99 = vector.broadcast %69 : f32 to vector<16x16xf32>
    %100 = arith.mulf %98, %99 : vector<16x16xf32>
    %101 = arith.addf %96, %100 : vector<16x16xf32>
    %c1_86 = arith.constant 1 : index
    %c2_87 = arith.constant 2 : index
    %c0_88 = arith.constant 0 : index
    %102 = vector.load %arg9[%c1_86, %c2_87, %c0_88] : memref<4x24x18xf32, #tpu.memory_space<vmem>>, vector<1x16x16xf32>
    %103 = vector.shape_cast %102 : vector<1x16x16xf32> to vector<16x16xf32>
    %104 = vector.broadcast %70 : f32 to vector<16x16xf32>
    %105 = arith.mulf %103, %104 : vector<16x16xf32>
    %106 = arith.addf %101, %105 : vector<16x16xf32>
    %c1_89 = arith.constant 1 : index
    %c2_90 = arith.constant 2 : index
    %c1_91 = arith.constant 1 : index
    %107 = vector.load %arg9[%c1_89, %c2_90, %c1_91] : memref<4x24x18xf32, #tpu.memory_space<vmem>>, vector<1x16x16xf32>
    %108 = vector.shape_cast %107 : vector<1x16x16xf32> to vector<16x16xf32>
    %109 = vector.broadcast %71 : f32 to vector<16x16xf32>
    %110 = arith.mulf %108, %109 : vector<16x16xf32>
    %111 = arith.addf %106, %110 : vector<16x16xf32>
    %c1_92 = arith.constant 1 : index
    %c2_93 = arith.constant 2 : index
    %c2_94 = arith.constant 2 : index
    %112 = vector.load %arg9[%c1_92, %c2_93, %c2_94] : memref<4x24x18xf32, #tpu.memory_space<vmem>>, vector<1x16x16xf32>
    %113 = vector.shape_cast %112 : vector<1x16x16xf32> to vector<16x16xf32>
    %114 = vector.broadcast %72 : f32 to vector<16x16xf32>
    %115 = arith.mulf %113, %114 : vector<16x16xf32>
    %116 = arith.addf %111, %115 : vector<16x16xf32>
    %c1_95 = arith.constant 1 : index
    %117 = memref.load %arg5[%c1_95] : memref<4xf32, #tpu.memory_space<smem>>
    %118 = vector.broadcast %117 : f32 to vector<16x16xf32>
    %119 = arith.addf %116, %118 : vector<16x16xf32>
    %cst_96 = arith.constant 0.000000e+00 : f32
    %120 = vector.broadcast %cst_96 : f32 to vector<16x16xf32>
    %121 = arith.maximumf %119, %120 : vector<16x16xf32>
    %c2_97 = arith.constant 2 : index
    %c0_98 = arith.constant 0 : index
    %122 = memref.load %arg4[%c2_97, %c0_98] : memref<4x9xf32, #tpu.memory_space<smem>>
    %c2_99 = arith.constant 2 : index
    %c1_100 = arith.constant 1 : index
    %123 = memref.load %arg4[%c2_99, %c1_100] : memref<4x9xf32, #tpu.memory_space<smem>>
    %c2_101 = arith.constant 2 : index
    %c2_102 = arith.constant 2 : index
    %124 = memref.load %arg4[%c2_101, %c2_102] : memref<4x9xf32, #tpu.memory_space<smem>>
    %c2_103 = arith.constant 2 : index
    %c3_104 = arith.constant 3 : index
    %125 = memref.load %arg4[%c2_103, %c3_104] : memref<4x9xf32, #tpu.memory_space<smem>>
    %c2_105 = arith.constant 2 : index
    %c4_106 = arith.constant 4 : index
    %126 = memref.load %arg4[%c2_105, %c4_106] : memref<4x9xf32, #tpu.memory_space<smem>>
    %c2_107 = arith.constant 2 : index
    %c5_108 = arith.constant 5 : index
    %127 = memref.load %arg4[%c2_107, %c5_108] : memref<4x9xf32, #tpu.memory_space<smem>>
    %c2_109 = arith.constant 2 : index
    %c6_110 = arith.constant 6 : index
    %128 = memref.load %arg4[%c2_109, %c6_110] : memref<4x9xf32, #tpu.memory_space<smem>>
    %c2_111 = arith.constant 2 : index
    %c7_112 = arith.constant 7 : index
    %129 = memref.load %arg4[%c2_111, %c7_112] : memref<4x9xf32, #tpu.memory_space<smem>>
    %c2_113 = arith.constant 2 : index
    %c8_114 = arith.constant 8 : index
    %130 = memref.load %arg4[%c2_113, %c8_114] : memref<4x9xf32, #tpu.memory_space<smem>>
    %c2_115 = arith.constant 2 : index
    %c0_116 = arith.constant 0 : index
    %c0_117 = arith.constant 0 : index
    %131 = vector.load %arg9[%c2_115, %c0_116, %c0_117] : memref<4x24x18xf32, #tpu.memory_space<vmem>>, vector<1x16x16xf32>
    %132 = vector.shape_cast %131 : vector<1x16x16xf32> to vector<16x16xf32>
    %133 = vector.broadcast %122 : f32 to vector<16x16xf32>
    %134 = arith.mulf %132, %133 : vector<16x16xf32>
    %c2_118 = arith.constant 2 : index
    %c0_119 = arith.constant 0 : index
    %c1_120 = arith.constant 1 : index
    %135 = vector.load %arg9[%c2_118, %c0_119, %c1_120] : memref<4x24x18xf32, #tpu.memory_space<vmem>>, vector<1x16x16xf32>
    %136 = vector.shape_cast %135 : vector<1x16x16xf32> to vector<16x16xf32>
    %137 = vector.broadcast %123 : f32 to vector<16x16xf32>
    %138 = arith.mulf %136, %137 : vector<16x16xf32>
    %139 = arith.addf %134, %138 : vector<16x16xf32>
    %c2_121 = arith.constant 2 : index
    %c0_122 = arith.constant 0 : index
    %c2_123 = arith.constant 2 : index
    %140 = vector.load %arg9[%c2_121, %c0_122, %c2_123] : memref<4x24x18xf32, #tpu.memory_space<vmem>>, vector<1x16x16xf32>
    %141 = vector.shape_cast %140 : vector<1x16x16xf32> to vector<16x16xf32>
    %142 = vector.broadcast %124 : f32 to vector<16x16xf32>
    %143 = arith.mulf %141, %142 : vector<16x16xf32>
    %144 = arith.addf %139, %143 : vector<16x16xf32>
    %c2_124 = arith.constant 2 : index
    %c1_125 = arith.constant 1 : index
    %c0_126 = arith.constant 0 : index
    %145 = vector.load %arg9[%c2_124, %c1_125, %c0_126] : memref<4x24x18xf32, #tpu.memory_space<vmem>>, vector<1x16x16xf32>
    %146 = vector.shape_cast %145 : vector<1x16x16xf32> to vector<16x16xf32>
    %147 = vector.broadcast %125 : f32 to vector<16x16xf32>
    %148 = arith.mulf %146, %147 : vector<16x16xf32>
    %149 = arith.addf %144, %148 : vector<16x16xf32>
    %c2_127 = arith.constant 2 : index
    %c1_128 = arith.constant 1 : index
    %c1_129 = arith.constant 1 : index
    %150 = vector.load %arg9[%c2_127, %c1_128, %c1_129] : memref<4x24x18xf32, #tpu.memory_space<vmem>>, vector<1x16x16xf32>
    %151 = vector.shape_cast %150 : vector<1x16x16xf32> to vector<16x16xf32>
    %152 = vector.broadcast %126 : f32 to vector<16x16xf32>
    %153 = arith.mulf %151, %152 : vector<16x16xf32>
    %154 = arith.addf %149, %153 : vector<16x16xf32>
    %c2_130 = arith.constant 2 : index
    %c1_131 = arith.constant 1 : index
    %c2_132 = arith.constant 2 : index
    %155 = vector.load %arg9[%c2_130, %c1_131, %c2_132] : memref<4x24x18xf32, #tpu.memory_space<vmem>>, vector<1x16x16xf32>
    %156 = vector.shape_cast %155 : vector<1x16x16xf32> to vector<16x16xf32>
    %157 = vector.broadcast %127 : f32 to vector<16x16xf32>
    %158 = arith.mulf %156, %157 : vector<16x16xf32>
    %159 = arith.addf %154, %158 : vector<16x16xf32>
    %c2_133 = arith.constant 2 : index
    %c2_134 = arith.constant 2 : index
    %c0_135 = arith.constant 0 : index
    %160 = vector.load %arg9[%c2_133, %c2_134, %c0_135] : memref<4x24x18xf32, #tpu.memory_space<vmem>>, vector<1x16x16xf32>
    %161 = vector.shape_cast %160 : vector<1x16x16xf32> to vector<16x16xf32>
    %162 = vector.broadcast %128 : f32 to vector<16x16xf32>
    %163 = arith.mulf %161, %162 : vector<16x16xf32>
    %164 = arith.addf %159, %163 : vector<16x16xf32>
    %c2_136 = arith.constant 2 : index
    %c2_137 = arith.constant 2 : index
    %c1_138 = arith.constant 1 : index
    %165 = vector.load %arg9[%c2_136, %c2_137, %c1_138] : memref<4x24x18xf32, #tpu.memory_space<vmem>>, vector<1x16x16xf32>
    %166 = vector.shape_cast %165 : vector<1x16x16xf32> to vector<16x16xf32>
    %167 = vector.broadcast %129 : f32 to vector<16x16xf32>
    %168 = arith.mulf %166, %167 : vector<16x16xf32>
    %169 = arith.addf %164, %168 : vector<16x16xf32>
    %c2_139 = arith.constant 2 : index
    %c2_140 = arith.constant 2 : index
    %c2_141 = arith.constant 2 : index
    %170 = vector.load %arg9[%c2_139, %c2_140, %c2_141] : memref<4x24x18xf32, #tpu.memory_space<vmem>>, vector<1x16x16xf32>
    %171 = vector.shape_cast %170 : vector<1x16x16xf32> to vector<16x16xf32>
    %172 = vector.broadcast %130 : f32 to vector<16x16xf32>
    %173 = arith.mulf %171, %172 : vector<16x16xf32>
    %174 = arith.addf %169, %173 : vector<16x16xf32>
    %c2_142 = arith.constant 2 : index
    %175 = memref.load %arg5[%c2_142] : memref<4xf32, #tpu.memory_space<smem>>
    %176 = vector.broadcast %175 : f32 to vector<16x16xf32>
    %177 = arith.addf %174, %176 : vector<16x16xf32>
    %cst_143 = arith.constant 0.000000e+00 : f32
    %178 = vector.broadcast %cst_143 : f32 to vector<16x16xf32>
    %179 = arith.maximumf %177, %178 : vector<16x16xf32>
    %c3_144 = arith.constant 3 : index
    %c0_145 = arith.constant 0 : index
    %180 = memref.load %arg4[%c3_144, %c0_145] : memref<4x9xf32, #tpu.memory_space<smem>>
    %c3_146 = arith.constant 3 : index
    %c1_147 = arith.constant 1 : index
    %181 = memref.load %arg4[%c3_146, %c1_147] : memref<4x9xf32, #tpu.memory_space<smem>>
    %c3_148 = arith.constant 3 : index
    %c2_149 = arith.constant 2 : index
    %182 = memref.load %arg4[%c3_148, %c2_149] : memref<4x9xf32, #tpu.memory_space<smem>>
    %c3_150 = arith.constant 3 : index
    %c3_151 = arith.constant 3 : index
    %183 = memref.load %arg4[%c3_150, %c3_151] : memref<4x9xf32, #tpu.memory_space<smem>>
    %c3_152 = arith.constant 3 : index
    %c4_153 = arith.constant 4 : index
    %184 = memref.load %arg4[%c3_152, %c4_153] : memref<4x9xf32, #tpu.memory_space<smem>>
    %c3_154 = arith.constant 3 : index
    %c5_155 = arith.constant 5 : index
    %185 = memref.load %arg4[%c3_154, %c5_155] : memref<4x9xf32, #tpu.memory_space<smem>>
    %c3_156 = arith.constant 3 : index
    %c6_157 = arith.constant 6 : index
    %186 = memref.load %arg4[%c3_156, %c6_157] : memref<4x9xf32, #tpu.memory_space<smem>>
    %c3_158 = arith.constant 3 : index
    %c7_159 = arith.constant 7 : index
    %187 = memref.load %arg4[%c3_158, %c7_159] : memref<4x9xf32, #tpu.memory_space<smem>>
    %c3_160 = arith.constant 3 : index
    %c8_161 = arith.constant 8 : index
    %188 = memref.load %arg4[%c3_160, %c8_161] : memref<4x9xf32, #tpu.memory_space<smem>>
    %c3_162 = arith.constant 3 : index
    %c0_163 = arith.constant 0 : index
    %c0_164 = arith.constant 0 : index
    %189 = vector.load %arg9[%c3_162, %c0_163, %c0_164] : memref<4x24x18xf32, #tpu.memory_space<vmem>>, vector<1x16x16xf32>
    %190 = vector.shape_cast %189 : vector<1x16x16xf32> to vector<16x16xf32>
    %191 = vector.broadcast %180 : f32 to vector<16x16xf32>
    %192 = arith.mulf %190, %191 : vector<16x16xf32>
    %c3_165 = arith.constant 3 : index
    %c0_166 = arith.constant 0 : index
    %c1_167 = arith.constant 1 : index
    %193 = vector.load %arg9[%c3_165, %c0_166, %c1_167] : memref<4x24x18xf32, #tpu.memory_space<vmem>>, vector<1x16x16xf32>
    %194 = vector.shape_cast %193 : vector<1x16x16xf32> to vector<16x16xf32>
    %195 = vector.broadcast %181 : f32 to vector<16x16xf32>
    %196 = arith.mulf %194, %195 : vector<16x16xf32>
    %197 = arith.addf %192, %196 : vector<16x16xf32>
    %c3_168 = arith.constant 3 : index
    %c0_169 = arith.constant 0 : index
    %c2_170 = arith.constant 2 : index
    %198 = vector.load %arg9[%c3_168, %c0_169, %c2_170] : memref<4x24x18xf32, #tpu.memory_space<vmem>>, vector<1x16x16xf32>
    %199 = vector.shape_cast %198 : vector<1x16x16xf32> to vector<16x16xf32>
    %200 = vector.broadcast %182 : f32 to vector<16x16xf32>
    %201 = arith.mulf %199, %200 : vector<16x16xf32>
    %202 = arith.addf %197, %201 : vector<16x16xf32>
    %c3_171 = arith.constant 3 : index
    %c1_172 = arith.constant 1 : index
    %c0_173 = arith.constant 0 : index
    %203 = vector.load %arg9[%c3_171, %c1_172, %c0_173] : memref<4x24x18xf32, #tpu.memory_space<vmem>>, vector<1x16x16xf32>
    %204 = vector.shape_cast %203 : vector<1x16x16xf32> to vector<16x16xf32>
    %205 = vector.broadcast %183 : f32 to vector<16x16xf32>
    %206 = arith.mulf %204, %205 : vector<16x16xf32>
    %207 = arith.addf %202, %206 : vector<16x16xf32>
    %c3_174 = arith.constant 3 : index
    %c1_175 = arith.constant 1 : index
    %c1_176 = arith.constant 1 : index
    %208 = vector.load %arg9[%c3_174, %c1_175, %c1_176] : memref<4x24x18xf32, #tpu.memory_space<vmem>>, vector<1x16x16xf32>
    %209 = vector.shape_cast %208 : vector<1x16x16xf32> to vector<16x16xf32>
    %210 = vector.broadcast %184 : f32 to vector<16x16xf32>
    %211 = arith.mulf %209, %210 : vector<16x16xf32>
    %212 = arith.addf %207, %211 : vector<16x16xf32>
    %c3_177 = arith.constant 3 : index
    %c1_178 = arith.constant 1 : index
    %c2_179 = arith.constant 2 : index
    %213 = vector.load %arg9[%c3_177, %c1_178, %c2_179] : memref<4x24x18xf32, #tpu.memory_space<vmem>>, vector<1x16x16xf32>
    %214 = vector.shape_cast %213 : vector<1x16x16xf32> to vector<16x16xf32>
    %215 = vector.broadcast %185 : f32 to vector<16x16xf32>
    %216 = arith.mulf %214, %215 : vector<16x16xf32>
    %217 = arith.addf %212, %216 : vector<16x16xf32>
    %c3_180 = arith.constant 3 : index
    %c2_181 = arith.constant 2 : index
    %c0_182 = arith.constant 0 : index
    %218 = vector.load %arg9[%c3_180, %c2_181, %c0_182] : memref<4x24x18xf32, #tpu.memory_space<vmem>>, vector<1x16x16xf32>
    %219 = vector.shape_cast %218 : vector<1x16x16xf32> to vector<16x16xf32>
    %220 = vector.broadcast %186 : f32 to vector<16x16xf32>
    %221 = arith.mulf %219, %220 : vector<16x16xf32>
    %222 = arith.addf %217, %221 : vector<16x16xf32>
    %c3_183 = arith.constant 3 : index
    %c2_184 = arith.constant 2 : index
    %c1_185 = arith.constant 1 : index
    %223 = vector.load %arg9[%c3_183, %c2_184, %c1_185] : memref<4x24x18xf32, #tpu.memory_space<vmem>>, vector<1x16x16xf32>
    %224 = vector.shape_cast %223 : vector<1x16x16xf32> to vector<16x16xf32>
    %225 = vector.broadcast %187 : f32 to vector<16x16xf32>
    %226 = arith.mulf %224, %225 : vector<16x16xf32>
    %227 = arith.addf %222, %226 : vector<16x16xf32>
    %c3_186 = arith.constant 3 : index
    %c2_187 = arith.constant 2 : index
    %c2_188 = arith.constant 2 : index
    %228 = vector.load %arg9[%c3_186, %c2_187, %c2_188] : memref<4x24x18xf32, #tpu.memory_space<vmem>>, vector<1x16x16xf32>
    %229 = vector.shape_cast %228 : vector<1x16x16xf32> to vector<16x16xf32>
    %230 = vector.broadcast %188 : f32 to vector<16x16xf32>
    %231 = arith.mulf %229, %230 : vector<16x16xf32>
    %232 = arith.addf %227, %231 : vector<16x16xf32>
    %c3_189 = arith.constant 3 : index
    %233 = memref.load %arg5[%c3_189] : memref<4xf32, #tpu.memory_space<smem>>
    %234 = vector.broadcast %233 : f32 to vector<16x16xf32>
    %235 = arith.addf %232, %234 : vector<16x16xf32>
    %cst_190 = arith.constant 0.000000e+00 : f32
    %236 = vector.broadcast %cst_190 : f32 to vector<16x16xf32>
    %237 = arith.maximumf %235, %236 : vector<16x16xf32>
    %c0_191 = arith.constant 0 : index
    %c0_192 = arith.constant 0 : index
    %238 = memref.load %arg6[%c0_191, %c0_192] : memref<8x4xf32, #tpu.memory_space<smem>>
    %239 = vector.broadcast %238 : f32 to vector<16x16xf32>
    %240 = arith.mulf %63, %239 : vector<16x16xf32>
    %c0_193 = arith.constant 0 : index
    %c1_194 = arith.constant 1 : index
    %241 = memref.load %arg6[%c0_193, %c1_194] : memref<8x4xf32, #tpu.memory_space<smem>>
    %242 = vector.broadcast %241 : f32 to vector<16x16xf32>
    %243 = arith.mulf %121, %242 : vector<16x16xf32>
    %244 = arith.addf %240, %243 : vector<16x16xf32>
    %c0_195 = arith.constant 0 : index
    %c2_196 = arith.constant 2 : index
    %245 = memref.load %arg6[%c0_195, %c2_196] : memref<8x4xf32, #tpu.memory_space<smem>>
    %246 = vector.broadcast %245 : f32 to vector<16x16xf32>
    %247 = arith.mulf %179, %246 : vector<16x16xf32>
    %248 = arith.addf %244, %247 : vector<16x16xf32>
    %c0_197 = arith.constant 0 : index
    %c3_198 = arith.constant 3 : index
    %249 = memref.load %arg6[%c0_197, %c3_198] : memref<8x4xf32, #tpu.memory_space<smem>>
    %250 = vector.broadcast %249 : f32 to vector<16x16xf32>
    %251 = arith.mulf %237, %250 : vector<16x16xf32>
    %252 = arith.addf %248, %251 : vector<16x16xf32>
    %c0_199 = arith.constant 0 : index
    %253 = memref.load %arg7[%c0_199] : memref<8xf32, #tpu.memory_space<smem>>
    %254 = vector.broadcast %253 : f32 to vector<16x16xf32>
    %255 = arith.addf %252, %254 : vector<16x16xf32>
    %c0_200 = arith.constant 0 : index
    %c0_201 = arith.constant 0 : index
    %c0_202 = arith.constant 0 : index
    %c0_203 = arith.constant 0 : index
    %256 = vector.load %arg8[%c0_200, %c0_201, %c0_202, %c0_203] : memref<1x8x16x16xf32, #tpu.memory_space<vmem>>, vector<1x1x16x16xf32>
    %257 = vector.shape_cast %256 : vector<1x1x16x16xf32> to vector<16x16xf32>
    %258 = vector.shape_cast %255 : vector<16x16xf32> to vector<1x1x16x16xf32>
    tpu.vector_store %arg8[%c0_200, %c0_201, %c0_202, %c0_203], %258 {strides = array<i32>} : memref<1x8x16x16xf32, #tpu.memory_space<vmem>>, vector<1x1x16x16xf32>,
    %c1_204 = arith.constant 1 : index
    %c0_205 = arith.constant 0 : index
    %259 = memref.load %arg6[%c1_204, %c0_205] : memref<8x4xf32, #tpu.memory_space<smem>>
    %260 = vector.broadcast %259 : f32 to vector<16x16xf32>
    %261 = arith.mulf %63, %260 : vector<16x16xf32>
    %c1_206 = arith.constant 1 : index
    %c1_207 = arith.constant 1 : index
    %262 = memref.load %arg6[%c1_206, %c1_207] : memref<8x4xf32, #tpu.memory_space<smem>>
    %263 = vector.broadcast %262 : f32 to vector<16x16xf32>
    %264 = arith.mulf %121, %263 : vector<16x16xf32>
    %265 = arith.addf %261, %264 : vector<16x16xf32>
    %c1_208 = arith.constant 1 : index
    %c2_209 = arith.constant 2 : index
    %266 = memref.load %arg6[%c1_208, %c2_209] : memref<8x4xf32, #tpu.memory_space<smem>>
    %267 = vector.broadcast %266 : f32 to vector<16x16xf32>
    %268 = arith.mulf %179, %267 : vector<16x16xf32>
    %269 = arith.addf %265, %268 : vector<16x16xf32>
    %c1_210 = arith.constant 1 : index
    %c3_211 = arith.constant 3 : index
    %270 = memref.load %arg6[%c1_210, %c3_211] : memref<8x4xf32, #tpu.memory_space<smem>>
    %271 = vector.broadcast %270 : f32 to vector<16x16xf32>
    %272 = arith.mulf %237, %271 : vector<16x16xf32>
    %273 = arith.addf %269, %272 : vector<16x16xf32>
    %c1_212 = arith.constant 1 : index
    %274 = memref.load %arg7[%c1_212] : memref<8xf32, #tpu.memory_space<smem>>
    %275 = vector.broadcast %274 : f32 to vector<16x16xf32>
    %276 = arith.addf %273, %275 : vector<16x16xf32>
    %c0_213 = arith.constant 0 : index
    %c1_214 = arith.constant 1 : index
    %c0_215 = arith.constant 0 : index
    %c0_216 = arith.constant 0 : index
    %277 = vector.load %arg8[%c0_213, %c1_214, %c0_215, %c0_216] : memref<1x8x16x16xf32, #tpu.memory_space<vmem>>, vector<1x1x16x16xf32>
    %278 = vector.shape_cast %277 : vector<1x1x16x16xf32> to vector<16x16xf32>
    %279 = vector.shape_cast %276 : vector<16x16xf32> to vector<1x1x16x16xf32>
    tpu.vector_store %arg8[%c0_213, %c1_214, %c0_215, %c0_216], %279 {strides = array<i32>} : memref<1x8x16x16xf32, #tpu.memory_space<vmem>>, vector<1x1x16x16xf32>,
    %c2_217 = arith.constant 2 : index
    %c0_218 = arith.constant 0 : index
    %280 = memref.load %arg6[%c2_217, %c0_218] : memref<8x4xf32, #tpu.memory_space<smem>>
    %281 = vector.broadcast %280 : f32 to vector<16x16xf32>
    %282 = arith.mulf %63, %281 : vector<16x16xf32>
    %c2_219 = arith.constant 2 : index
    %c1_220 = arith.constant 1 : index
    %283 = memref.load %arg6[%c2_219, %c1_220] : memref<8x4xf32, #tpu.memory_space<smem>>
    %284 = vector.broadcast %283 : f32 to vector<16x16xf32>
    %285 = arith.mulf %121, %284 : vector<16x16xf32>
    %286 = arith.addf %282, %285 : vector<16x16xf32>
    %c2_221 = arith.constant 2 : index
    %c2_222 = arith.constant 2 : index
    %287 = memref.load %arg6[%c2_221, %c2_222] : memref<8x4xf32, #tpu.memory_space<smem>>
    %288 = vector.broadcast %287 : f32 to vector<16x16xf32>
    %289 = arith.mulf %179, %288 : vector<16x16xf32>
    %290 = arith.addf %286, %289 : vector<16x16xf32>
    %c2_223 = arith.constant 2 : index
    %c3_224 = arith.constant 3 : index
    %291 = memref.load %arg6[%c2_223, %c3_224] : memref<8x4xf32, #tpu.memory_space<smem>>
    %292 = vector.broadcast %291 : f32 to vector<16x16xf32>
    %293 = arith.mulf %237, %292 : vector<16x16xf32>
    %294 = arith.addf %290, %293 : vector<16x16xf32>
    %c2_225 = arith.constant 2 : index
    %295 = memref.load %arg7[%c2_225] : memref<8xf32, #tpu.memory_space<smem>>
    %296 = vector.broadcast %295 : f32 to vector<16x16xf32>
    %297 = arith.addf %294, %296 : vector<16x16xf32>
    %c0_226 = arith.constant 0 : index
    %c2_227 = arith.constant 2 : index
    %c0_228 = arith.constant 0 : index
    %c0_229 = arith.constant 0 : index
    %298 = vector.load %arg8[%c0_226, %c2_227, %c0_228, %c0_229] : memref<1x8x16x16xf32, #tpu.memory_space<vmem>>, vector<1x1x16x16xf32>
    %299 = vector.shape_cast %298 : vector<1x1x16x16xf32> to vector<16x16xf32>
    %300 = vector.shape_cast %297 : vector<16x16xf32> to vector<1x1x16x16xf32>
    tpu.vector_store %arg8[%c0_226, %c2_227, %c0_228, %c0_229], %300 {strides = array<i32>} : memref<1x8x16x16xf32, #tpu.memory_space<vmem>>, vector<1x1x16x16xf32>,
    %c3_230 = arith.constant 3 : index
    %c0_231 = arith.constant 0 : index
    %301 = memref.load %arg6[%c3_230, %c0_231] : memref<8x4xf32, #tpu.memory_space<smem>>
    %302 = vector.broadcast %301 : f32 to vector<16x16xf32>
    %303 = arith.mulf %63, %302 : vector<16x16xf32>
    %c3_232 = arith.constant 3 : index
    %c1_233 = arith.constant 1 : index
    %304 = memref.load %arg6[%c3_232, %c1_233] : memref<8x4xf32, #tpu.memory_space<smem>>
    %305 = vector.broadcast %304 : f32 to vector<16x16xf32>
    %306 = arith.mulf %121, %305 : vector<16x16xf32>
    %307 = arith.addf %303, %306 : vector<16x16xf32>
    %c3_234 = arith.constant 3 : index
    %c2_235 = arith.constant 2 : index
    %308 = memref.load %arg6[%c3_234, %c2_235] : memref<8x4xf32, #tpu.memory_space<smem>>
    %309 = vector.broadcast %308 : f32 to vector<16x16xf32>
    %310 = arith.mulf %179, %309 : vector<16x16xf32>
    %311 = arith.addf %307, %310 : vector<16x16xf32>
    %c3_236 = arith.constant 3 : index
    %c3_237 = arith.constant 3 : index
    %312 = memref.load %arg6[%c3_236, %c3_237] : memref<8x4xf32, #tpu.memory_space<smem>>
    %313 = vector.broadcast %312 : f32 to vector<16x16xf32>
    %314 = arith.mulf %237, %313 : vector<16x16xf32>
    %315 = arith.addf %311, %314 : vector<16x16xf32>
    %c3_238 = arith.constant 3 : index
    %316 = memref.load %arg7[%c3_238] : memref<8xf32, #tpu.memory_space<smem>>
    %317 = vector.broadcast %316 : f32 to vector<16x16xf32>
    %318 = arith.addf %315, %317 : vector<16x16xf32>
    %c0_239 = arith.constant 0 : index
    %c3_240 = arith.constant 3 : index
    %c0_241 = arith.constant 0 : index
    %c0_242 = arith.constant 0 : index
    %319 = vector.load %arg8[%c0_239, %c3_240, %c0_241, %c0_242] : memref<1x8x16x16xf32, #tpu.memory_space<vmem>>, vector<1x1x16x16xf32>
    %320 = vector.shape_cast %319 : vector<1x1x16x16xf32> to vector<16x16xf32>
    %321 = vector.shape_cast %318 : vector<16x16xf32> to vector<1x1x16x16xf32>
    tpu.vector_store %arg8[%c0_239, %c3_240, %c0_241, %c0_242], %321 {strides = array<i32>} : memref<1x8x16x16xf32, #tpu.memory_space<vmem>>, vector<1x1x16x16xf32>,
    %c4_243 = arith.constant 4 : index
    %c0_244 = arith.constant 0 : index
    %322 = memref.load %arg6[%c4_243, %c0_244] : memref<8x4xf32, #tpu.memory_space<smem>>
    %323 = vector.broadcast %322 : f32 to vector<16x16xf32>
    %324 = arith.mulf %63, %323 : vector<16x16xf32>
    %c4_245 = arith.constant 4 : index
    %c1_246 = arith.constant 1 : index
    %325 = memref.load %arg6[%c4_245, %c1_246] : memref<8x4xf32, #tpu.memory_space<smem>>
    %326 = vector.broadcast %325 : f32 to vector<16x16xf32>
    %327 = arith.mulf %121, %326 : vector<16x16xf32>
    %328 = arith.addf %324, %327 : vector<16x16xf32>
    %c4_247 = arith.constant 4 : index
    %c2_248 = arith.constant 2 : index
    %329 = memref.load %arg6[%c4_247, %c2_248] : memref<8x4xf32, #tpu.memory_space<smem>>
    %330 = vector.broadcast %329 : f32 to vector<16x16xf32>
    %331 = arith.mulf %179, %330 : vector<16x16xf32>
    %332 = arith.addf %328, %331 : vector<16x16xf32>
    %c4_249 = arith.constant 4 : index
    %c3_250 = arith.constant 3 : index
    %333 = memref.load %arg6[%c4_249, %c3_250] : memref<8x4xf32, #tpu.memory_space<smem>>
    %334 = vector.broadcast %333 : f32 to vector<16x16xf32>
    %335 = arith.mulf %237, %334 : vector<16x16xf32>
    %336 = arith.addf %332, %335 : vector<16x16xf32>
    %c4_251 = arith.constant 4 : index
    %337 = memref.load %arg7[%c4_251] : memref<8xf32, #tpu.memory_space<smem>>
    %338 = vector.broadcast %337 : f32 to vector<16x16xf32>
    %339 = arith.addf %336, %338 : vector<16x16xf32>
    %c0_252 = arith.constant 0 : index
    %c4_253 = arith.constant 4 : index
    %c0_254 = arith.constant 0 : index
    %c0_255 = arith.constant 0 : index
    %340 = vector.load %arg8[%c0_252, %c4_253, %c0_254, %c0_255] : memref<1x8x16x16xf32, #tpu.memory_space<vmem>>, vector<1x1x16x16xf32>
    %341 = vector.shape_cast %340 : vector<1x1x16x16xf32> to vector<16x16xf32>
    %342 = vector.shape_cast %339 : vector<16x16xf32> to vector<1x1x16x16xf32>
    tpu.vector_store %arg8[%c0_252, %c4_253, %c0_254, %c0_255], %342 {strides = array<i32>} : memref<1x8x16x16xf32, #tpu.memory_space<vmem>>, vector<1x1x16x16xf32>,
    %c5_256 = arith.constant 5 : index
    %c0_257 = arith.constant 0 : index
    %343 = memref.load %arg6[%c5_256, %c0_257] : memref<8x4xf32, #tpu.memory_space<smem>>
    %344 = vector.broadcast %343 : f32 to vector<16x16xf32>
    %345 = arith.mulf %63, %344 : vector<16x16xf32>
    %c5_258 = arith.constant 5 : index
    %c1_259 = arith.constant 1 : index
    %346 = memref.load %arg6[%c5_258, %c1_259] : memref<8x4xf32, #tpu.memory_space<smem>>
    %347 = vector.broadcast %346 : f32 to vector<16x16xf32>
    %348 = arith.mulf %121, %347 : vector<16x16xf32>
    %349 = arith.addf %345, %348 : vector<16x16xf32>
    %c5_260 = arith.constant 5 : index
    %c2_261 = arith.constant 2 : index
    %350 = memref.load %arg6[%c5_260, %c2_261] : memref<8x4xf32, #tpu.memory_space<smem>>
    %351 = vector.broadcast %350 : f32 to vector<16x16xf32>
    %352 = arith.mulf %179, %351 : vector<16x16xf32>
    %353 = arith.addf %349, %352 : vector<16x16xf32>
    %c5_262 = arith.constant 5 : index
    %c3_263 = arith.constant 3 : index
    %354 = memref.load %arg6[%c5_262, %c3_263] : memref<8x4xf32, #tpu.memory_space<smem>>
    %355 = vector.broadcast %354 : f32 to vector<16x16xf32>
    %356 = arith.mulf %237, %355 : vector<16x16xf32>
    %357 = arith.addf %353, %356 : vector<16x16xf32>
    %c5_264 = arith.constant 5 : index
    %358 = memref.load %arg7[%c5_264] : memref<8xf32, #tpu.memory_space<smem>>
    %359 = vector.broadcast %358 : f32 to vector<16x16xf32>
    %360 = arith.addf %357, %359 : vector<16x16xf32>
    %c0_265 = arith.constant 0 : index
    %c5_266 = arith.constant 5 : index
    %c0_267 = arith.constant 0 : index
    %c0_268 = arith.constant 0 : index
    %361 = vector.load %arg8[%c0_265, %c5_266, %c0_267, %c0_268] : memref<1x8x16x16xf32, #tpu.memory_space<vmem>>, vector<1x1x16x16xf32>
    %362 = vector.shape_cast %361 : vector<1x1x16x16xf32> to vector<16x16xf32>
    %363 = vector.shape_cast %360 : vector<16x16xf32> to vector<1x1x16x16xf32>
    tpu.vector_store %arg8[%c0_265, %c5_266, %c0_267, %c0_268], %363 {strides = array<i32>} : memref<1x8x16x16xf32, #tpu.memory_space<vmem>>, vector<1x1x16x16xf32>,
    %c6_269 = arith.constant 6 : index
    %c0_270 = arith.constant 0 : index
    %364 = memref.load %arg6[%c6_269, %c0_270] : memref<8x4xf32, #tpu.memory_space<smem>>
    %365 = vector.broadcast %364 : f32 to vector<16x16xf32>
    %366 = arith.mulf %63, %365 : vector<16x16xf32>
    %c6_271 = arith.constant 6 : index
    %c1_272 = arith.constant 1 : index
    %367 = memref.load %arg6[%c6_271, %c1_272] : memref<8x4xf32, #tpu.memory_space<smem>>
    %368 = vector.broadcast %367 : f32 to vector<16x16xf32>
    %369 = arith.mulf %121, %368 : vector<16x16xf32>
    %370 = arith.addf %366, %369 : vector<16x16xf32>
    %c6_273 = arith.constant 6 : index
    %c2_274 = arith.constant 2 : index
    %371 = memref.load %arg6[%c6_273, %c2_274] : memref<8x4xf32, #tpu.memory_space<smem>>
    %372 = vector.broadcast %371 : f32 to vector<16x16xf32>
    %373 = arith.mulf %179, %372 : vector<16x16xf32>
    %374 = arith.addf %370, %373 : vector<16x16xf32>
    %c6_275 = arith.constant 6 : index
    %c3_276 = arith.constant 3 : index
    %375 = memref.load %arg6[%c6_275, %c3_276] : memref<8x4xf32, #tpu.memory_space<smem>>
    %376 = vector.broadcast %375 : f32 to vector<16x16xf32>
    %377 = arith.mulf %237, %376 : vector<16x16xf32>
    %378 = arith.addf %374, %377 : vector<16x16xf32>
    %c6_277 = arith.constant 6 : index
    %379 = memref.load %arg7[%c6_277] : memref<8xf32, #tpu.memory_space<smem>>
    %380 = vector.broadcast %379 : f32 to vector<16x16xf32>
    %381 = arith.addf %378, %380 : vector<16x16xf32>
    %c0_278 = arith.constant 0 : index
    %c6_279 = arith.constant 6 : index
    %c0_280 = arith.constant 0 : index
    %c0_281 = arith.constant 0 : index
    %382 = vector.load %arg8[%c0_278, %c6_279, %c0_280, %c0_281] : memref<1x8x16x16xf32, #tpu.memory_space<vmem>>, vector<1x1x16x16xf32>
    %383 = vector.shape_cast %382 : vector<1x1x16x16xf32> to vector<16x16xf32>
    %384 = vector.shape_cast %381 : vector<16x16xf32> to vector<1x1x16x16xf32>
    tpu.vector_store %arg8[%c0_278, %c6_279, %c0_280, %c0_281], %384 {strides = array<i32>} : memref<1x8x16x16xf32, #tpu.memory_space<vmem>>, vector<1x1x16x16xf32>,
    %c7_282 = arith.constant 7 : index
    %c0_283 = arith.constant 0 : index
    %385 = memref.load %arg6[%c7_282, %c0_283] : memref<8x4xf32, #tpu.memory_space<smem>>
    %386 = vector.broadcast %385 : f32 to vector<16x16xf32>
    %387 = arith.mulf %63, %386 : vector<16x16xf32>
    %c7_284 = arith.constant 7 : index
    %c1_285 = arith.constant 1 : index
    %388 = memref.load %arg6[%c7_284, %c1_285] : memref<8x4xf32, #tpu.memory_space<smem>>
    %389 = vector.broadcast %388 : f32 to vector<16x16xf32>
    %390 = arith.mulf %121, %389 : vector<16x16xf32>
    %391 = arith.addf %387, %390 : vector<16x16xf32>
    %c7_286 = arith.constant 7 : index
    %c2_287 = arith.constant 2 : index
    %392 = memref.load %arg6[%c7_286, %c2_287] : memref<8x4xf32, #tpu.memory_space<smem>>
    %393 = vector.broadcast %392 : f32 to vector<16x16xf32>
    %394 = arith.mulf %179, %393 : vector<16x16xf32>
    %395 = arith.addf %391, %394 : vector<16x16xf32>
    %c7_288 = arith.constant 7 : index
    %c3_289 = arith.constant 3 : index
    %396 = memref.load %arg6[%c7_288, %c3_289] : memref<8x4xf32, #tpu.memory_space<smem>>
    %397 = vector.broadcast %396 : f32 to vector<16x16xf32>
    %398 = arith.mulf %237, %397 : vector<16x16xf32>
    %399 = arith.addf %395, %398 : vector<16x16xf32>
    %c7_290 = arith.constant 7 : index
    %400 = memref.load %arg7[%c7_290] : memref<8xf32, #tpu.memory_space<smem>>
    %401 = vector.broadcast %400 : f32 to vector<16x16xf32>
    %402 = arith.addf %399, %401 : vector<16x16xf32>
    %c0_291 = arith.constant 0 : index
    %c7_292 = arith.constant 7 : index
    %c0_293 = arith.constant 0 : index
    %c0_294 = arith.constant 0 : index
    %403 = vector.load %arg8[%c0_291, %c7_292, %c0_293, %c0_294] : memref<1x8x16x16xf32, #tpu.memory_space<vmem>>, vector<1x1x16x16xf32>
    %404 = vector.shape_cast %403 : vector<1x1x16x16xf32> to vector<16x16xf32>
    %405 = vector.shape_cast %402 : vector<16x16xf32> to vector<1x1x16x16xf32>
    tpu.vector_store %arg8[%c0_291, %c7_292, %c0_293, %c0_294], %405 {strides = array<i32>} : memref<1x8x16x16xf32, #tpu.memory_space<vmem>>, vector<1x1x16x16xf32>,
    return
  }
  func.func @transform_0(%arg0: i32, %arg1: i32) -> (i32, i32, i32, i32) {
    %c0_i32 = arith.constant 0 : i32
    %c0_i32_0 = arith.constant 0 : i32
    %c0_i32_1 = arith.constant 0 : i32
    return %arg0, %c0_i32, %arg1, %c0_i32_0 : i32, i32, i32, i32
  }
  func.func @transform_1(%arg0: i32, %arg1: i32) -> (i32, i32, i32, i32) {
    %c1_i32 = arith.constant 1 : i32
    %0 = arith.addi %arg1, %c1_i32 : i32
    %c2_i32 = arith.constant 2 : i32
    %1 = arith.muli %0, %c2_i32 : i32
    %c0_i32 = arith.constant 0 : i32
    %c0_i32_0 = arith.constant 0 : i32
    %c0_i32_1 = arith.constant 0 : i32
    return %arg0, %c0_i32, %1, %c0_i32_0 : i32, i32, i32, i32
  }
  func.func @transform_2(%arg0: i32, %arg1: i32) -> (i32, i32) {
    %c0_i32 = arith.constant 0 : i32
    %c0_i32_0 = arith.constant 0 : i32
    %c0_i32_1 = arith.constant 0 : i32
    return %c0_i32, %c0_i32_0 : i32, i32
  }
  func.func @transform_3(%arg0: i32, %arg1: i32) -> i32 {
    %c0_i32 = arith.constant 0 : i32
    %c0_i32_0 = arith.constant 0 : i32
    return %c0_i32 : i32
  }
  func.func @transform_4(%arg0: i32, %arg1: i32) -> (i32, i32) {
    %c0_i32 = arith.constant 0 : i32
    %c0_i32_0 = arith.constant 0 : i32
    %c0_i32_1 = arith.constant 0 : i32
    return %c0_i32, %c0_i32_0 : i32, i32
  }
  func.func @transform_5(%arg0: i32, %arg1: i32) -> i32 {
    %c0_i32 = arith.constant 0 : i32
    %c0_i32_0 = arith.constant 0 : i32
    return %c0_i32 : i32
  }
  func.func @transform_6(%arg0: i32, %arg1: i32) -> (i32, i32, i32, i32) {
    %c0_i32 = arith.constant 0 : i32
    %c0_i32_0 = arith.constant 0 : i32
    %c0_i32_1 = arith.constant 0 : i32
    return %arg0, %c0_i32, %arg1, %c0_i32_0 : i32, i32, i32, i32
  }
}

</mosaic_0001>

<bundles_post_ra>
// kernel: sep_conv2d.1
= control target key start
LH: loop header
LB: loop body
LE: loop exit
PB: predicated region body
PF: predicated region fallthrough
CT: control target
= control target key end

     0   :  { %s2639_s0 = inlined_call_operand.vmem [shape: f32[2,4,24,18], index: 0, kind: input, shape index: {}, may-alias: {0,1}]   ;;  %s2640_s1 = inlined_call_operand.vmem [shape: f32[2,4,24,18], index: 1, kind: input, shape index: {}, may-alias: {0,1}]   ;;  %s2641_s2 = inlined_call_operand.vmem [shape: f32[4,9], index: 2, kind: input, shape index: {}]   ;;  %s2642_s3 = inlined_call_operand.vmem [shape: f32[4], index: 3, kind: input, shape index: {}]   ;;  %s2643_s4 = inlined_call_operand.vmem [shape: f32[8,4], index: 4, kind: input, shape index: {}]   ;;  %s2644_s5 = inlined_call_operand.vmem [shape: f32[8], index: 5, kind: input, shape index: {}]   ;;  %s2645_s6 = inlined_call_operand.hbm [shape: f32[2,8,16,16], index: 6, kind: output, shape index: {}]  }
   0x1   :  { %2653 = sst [smem:[#allocation25_spill]] %s2639_s0 }
   0x2   :  { %2654 = sst [smem:[#allocation26_spill]] %s2640_s1 }
   0x3   :  { %2655 = sst [smem:[#allocation27_spill]] %s2641_s2 }
   0x4   :  { %2656 = sst [smem:[#allocation28_spill]] %s2642_s3 }
   0x5   :  { %2657 = sst [smem:[#allocation29_spill]] %s2643_s4 }
   0x6   :  { %2658 = sst [smem:[#allocation30_spill]] %s2644_s5 }
   0x7   :  { %11 = vsyncpa [#allocation7], 0 }
   0x8   :  { %12 = vsyncpa [#allocation9], 0 }
   0x9   :  { %13 = vsyncpa [#allocation12], 0 }
   0xa   :  { %14 = vsyncpa [#allocation6], 0 }
   0xb   :  { %16 = vsyncpa [#allocation6 + $0x1], 0  ;;  %s1950_s21 = smov 0   ;;  %s1952_s22 = smov 0  }
   0xc   :  { %s1954_s23 = smov 0   ;;  %s1956_s24 = smov 0  }
   0xd   :  { %s1958_s25 = smov 0   ;;  %s1960_s26 = smov 0  }
   0xe LB: > { %2659 = sst [smem:[#allocation18_spill]] %s1885_s22  ;;  %s1474_s27 = sadd.s32 4294967295, %s1901_s26   ;;  %s1901_s26 = sphi %s1960_s26, %s22_s26   ;;  %s1897_s25 = sphi %s1958_s25, %s2690_s25   ;;  %s1893_s24 = sphi %s1956_s24, %s2689_s24   ;;  %s1889_s23 = sphi %s1954_s23, %s2688_s23   ;;  %s1885_s22 = sphi %s1952_s22, %s2687_s22   ;;  %s1881_s21 = sphi %s1950_s21, %s2686_s21  }
   0xf   : > { %2660 = sst [smem:[#allocation19_spill]] %s1889_s23  ;;  %s1475_s28 = sadd.s32 4294967294, %s1901_s26  }
  0x10   : > { %2661 = sst [smem:[#allocation20_spill]] %s1897_s25  ;;  %s34_s29 = sadd.s32 1, %s1897_s25 }
  0x11   : > { %2662 = sst [smem:[#allocation21_spill]] %s1901_s26  ;;  %s43_s30 = sadd.s32 1, %s1889_s23 }
  0x12   : > { %p36_p0 = scmp.ge.s32.totalorder %s34_s29, 2  ;;  %p50_p1 = scmp.ne.s32.totalorder %s1889_s23, %s1885_s22 }
  0x13   : > { %p51_p2 = scmp.eq.s32.totalorder %s1901_s26, 0  ;;  %p198_p3 = scmp.eq.s32.totalorder %s1474_s27, 1 }
  0x14   : > { %s2692_s29 = smov (%p36_p0, %s34_s29), 0  ;;  %p203_p6 = scmp.ne.s32.totalorder %s1885_s22, %s1881_s21 }
  0x15   : > { %2663 = sst [smem:[#allocation22_spill]] %s2692_s29  ;;  %p1989_p4 = por %p51_p2, %p50_p1 }
  0x16   : > { %p1993_p5 = por %p198_p3, %p50_p1  ;;  %s38_s9 = ssub.s32 %s1897_s25, %s2692_s29 }
  0x17   : > { %p41_p7 = scmp.eq.s32.totalorder %s38_s9, 0  ;;  %p204_p8 = scmp.eq.s32.totalorder %s1475_s28, 1 }
  0x18   : > { %p1476_p9 = scmp.ge.s32.totalorder %s1901_s26, 1  ;;  %p211_p10 = scmp.lt.s32.totalorder %s1901_s26, 3 }
  0x19   : > { %s2004_s10 = scalar_select %p41_p7, %s1889_s23, %s43_s30  }
  0x1a   : > { %p2006_p11 = por %p204_p8, %p203_p6  ;;  %p2010_p12 = pnand %p1476_p9, %p211_p10 }
  0x1b   : > { %2666 = sst [smem:[#allocation23_spill]] %s2004_s10  ;;  %p2014_p13 = scmp.eq.s32.totalorder %s1474_s27, 0 }
  0x1c   : > { %s2667_s11 = scalar_select %p2006_p11, 1, 0 }
  0x1d   : > { %p1621_p0 = pneg %p2010_p12  ;;  %s2671_s3 = sld [smem:[#allocation28_spill]] }
  0x1e   : > { %2668 = sst [smem:[#allocation24_spill]] %s2667_s11  ;;  %s1907_s27 = smov [#allocation8]  }
  0x1f   : > { %p2025_p1 = pnand %p2014_p13, %p1621_p0  ;;  %s2673_s2 = sld [smem:[#allocation27_spill]] }
  0x20   : > { %s2674_s4 = sld [smem:[#allocation29_spill]]  ;;  %s1908_s14 = smov [#allocation5]  }
  0x21   : > { %s1909_s15 = smov [#allocation10]   ;;  %s2675_s5 = sld [smem:[#allocation30_spill]] }
  0x22   : > { %p1481_p2 = scmp.ge.s32.totalorder %s1901_s26, 2 }
  0x23   : > { %s233_s16 = sshll.u32 %s2671_s3, 4  ;;  %s234_s16 = int_to_ptr.vmem [resolvable:$true] %s233_s16 }
  0x24   : > { %1627 = dma.vmem_to_smem (!%p2025_p1), %s234_s16, 16, %s1907_s27, [#allocation9]  }
  0x25   : > { %s223_s20 = sshll.u32 %s2673_s2, 4  ;;  %s1910_s2 = smov [#allocation11]   ;;  %s224_s20 = int_to_ptr.vmem [resolvable:$true] %s223_s20 }
  0x26   : > { %s243_s9 = sshll.u32 %s2674_s4, 4  ;;  %260 = sbr.rel (%p1481_p2) target bundleno = 75 (0x4b), region = 32  ;;  %s244_s9 = int_to_ptr.vmem [resolvable:$true] %s243_s9 }
  0x27   : > { %1624 = dma.vmem_to_smem (!%p2025_p1), %s224_s20, 64, %s1908_s14, [#allocation7]  }
  0x28   : > { %1630 = dma.vmem_to_smem (!%p2025_p1), %s244_s9, 128, %s1909_s15, [#allocation9]  }
  0x29   : > { %s253_s3 = sshll.u32 %s2675_s5, 4  ;;  %s254_s3 = int_to_ptr.vmem [resolvable:$true] %s253_s3 }
  0x2a   : > { %1633 = dma.vmem_to_smem (!%p2025_p1), %s254_s3, 16, %s1910_s2, [#allocation12]  }
  0x2b   : > { %263 = sbr.rel (!%p1989_p4) target bundleno = 61 (0x3d), region = 36  ;;  %s265_s16 = sand.u32 (%p1989_p4), 1, %s1889_s23  }
  0x2c   : > { %s1602_s20 = smul.u32 (%p1989_p4), 96, %s1897_s25  ;;  %s1482_s27 = sshll.u32 (%p1989_p4), %s265_s16, 6 }
  0x2d   : > { %s2676_s0 = sld [smem:[#allocation25_spill]] (%p1989_p4)  ;;  %s267_s14 = scalar_lea.vmem (%p1989_p4), [#allocation3], %s1482_s27  }
  0x2e   : > { %s1903_s17 = smov (%p1989_p4), 0  }
  0x33   : > { %s277_s9 = scalar_lea.vmem %s2676_s0, %s1602_s20  }
  0x34 LB: >> { %v363_v0 = vld [vmem:[%s277_s9] sm:$0xff]  ;;  %v365_v1 = vld [vmem:[%s277_s9 + $0x8] sm:$0xff]  ;;  %v367_v2 = vld [vmem:[%s277_s9 + $0x18] sm:$0xff]  ;;  %s357_s17 = sadd.s32 1, %s1905_s17   ;;  %s1905_s17 = sphi %s1903_s17, %s357_s17  }
  0x35   : >> { %364 = vst [vmem:[%s267_s14] sm:$0xff] %v363_v0  ;;  %v369_v3 = vld [vmem:[%s277_s9 + $0x20] sm:$0xff]  ;;  %v371_v4 = vld [vmem:[%s277_s9 + $0x30] sm:$0xff]  ;;  %v373_v5 = vld [vmem:[%s277_s9 + $0x38] sm:$0xff]  ;;  %p356_p3 = scmp.ge.s32.totalorder %s357_s17, 1 }
  0x36   : >> { %366 = vst [vmem:[%s267_s14 + $0x8] sm:$0xff] %v365_v1  ;;  %v375_v6 = vld [vmem:[%s277_s9 + $0x48] sm:$0xff]  ;;  %v377_v7 = vld [vmem:[%s277_s9 + $0x50] sm:$0xff] }
  0x37   : >> { %368 = vst [vmem:[%s267_s14 + $0x10] sm:$0xff] %v367_v2 }
  0x38   : >> { %370 = vst [vmem:[%s267_s14 + $0x18] sm:$0xff] %v369_v3  ;;  %359 = sbr.rel (!%p356_p3) target bundleno = 52 (0x34), region = 217 }
  0x39   : >> { %372 = vst [vmem:[%s267_s14 + $0x20] sm:$0xff] %v371_v4 }
  0x3a   : >> { %374 = vst [vmem:[%s267_s14 + $0x28] sm:$0xff] %v373_v5 }
  0x3b   : >> { %376 = vst [vmem:[%s267_s14 + $0x30] sm:$0xff] %v375_v6 }
  0x3c   : >> { %378 = vst [vmem:[%s267_s14 + $0x38] sm:$0xff] %v377_v7 }
  0x3d PF: > { %422 = sbr.rel (!%p1989_p4) target bundleno = 75 (0x4b), region = 88  ;;  %s424_s2 = sand.u32 (%p1989_p4), 1, %s1889_s23  }
  0x3e   : > { %s1493_s3 = smul.u32 (%p1989_p4), 96, %s1897_s25  ;;  %s1492_s15 = sshll.u32 (%p1989_p4), %s424_s2, 5 }
  0x3f   : > { %s2677_s1 = sld [smem:[#allocation26_spill]] (%p1989_p4)  ;;  %s426_s20 = scalar_lea.vmem (%p1989_p4), [#allocation4], %s1492_s15 }
  0x45   : > { %s1347_s16 = scalar_lea.vmem %s2677_s1, %s1493_s3 }
  0x46   : > { %v1494_v8 = vld [vmem:[%s1347_s16 + $0x10] sm:$0xff]  ;;  %v1495_v9 = vld [vmem:[%s1347_s16 + $0x28] sm:$0xff]  ;;  %v1496_v10 = vld [vmem:[%s1347_s16 + $0x40] sm:$0xff] }
  0x47   : > { %468 = vst [vmem:[%s426_s20] sm:$0xff] %v1494_v8  ;;  %v1497_v11 = vld [vmem:[%s1347_s16 + $0x58] sm:$0xff] }
  0x48   : > { %470 = vst [vmem:[%s426_s20 + $0x8] sm:$0xff] %v1495_v9 }
  0x49   : > { %472 = vst [vmem:[%s426_s20 + $0x10] sm:$0xff] %v1496_v10 }
  0x4a   : > { %474 = vst [vmem:[%s426_s20 + $0x18] sm:$0xff] %v1497_v11 }
  0x4b PF: > { %483 = sbr.rel (%p2010_p12) target bundleno = 364 (0x16c), region = 126  ;;  %s2066_s7 = sand.u32 (!%p2010_p12), 1, %s1885_s22  }
  0x4c   : > { %s1499_s27 = sshll.u32 (!%p2010_p12), %s2066_s7, 6  ;;  %s1500_s28 = sshll.u32 (!%p2010_p12), %s2066_s7, 5 }
  0x4d   : > { %s2070_s30 = scalar_lea.vmem (!%p2010_p12), [#allocation3], %s1499_s27  ;;  %s2072_s9 = scalar_lea.vmem (!%p2010_p12), [#allocation4], %s1500_s28 }
  0x50   : > { %1864 = dma.done.wait (%p2014_p13), [#allocation7], 64  }
  0x51   : > { %1866 = vsyncadd (%p2014_p13), [#allocation7], 4294967232 }
  0x52   : > { %1868 = dma.done.wait (%p2014_p13), [#allocation9], 144  }
  0x53   : > { %1870 = vsyncadd (%p2014_p13), [#allocation9], 4294967152 }
  0x54   : > { %1872 = dma.done.wait (%p2014_p13), [#allocation12], 16  }
  0x55   : > { %1874 = vsyncadd (%p2014_p13), [#allocation12], 4294967280 }
  0x56   : > { %519 = sfence }
  0x57   : > { %v555_v12 = vld [vmem:[%s2070_s30] sm:$0xff]  ;;  %v556_v13 = vld [vmem:[%s2070_s30 + $0x8] sm:$0xff]  ;;  %vm563_vm0 = vcmask 146432   ;;  %s1507_s12 = sld [smem:[#allocation5 + $0x2]]  ;;  %v558_v15 = vld [vmem:[%s2070_s30 + $0x18] sm:$0xff]  ;;  %s1911_s17 = smov 126  }
  0x58   : > { %564 = vst.msk [vmem:[#allocation2] sm:$0xff] %vm563_vm0, %v555_v12  ;;  %s1506_s14 = sld [smem:[#allocation5 + $0x1]]  ;;  %v572_v14 = vld [vmem:[%s2072_s9] sm:$0xff]  ;;  %v557_v16 = vld [vmem:[%s2070_s30 + $0x10] sm:$0xff]  ;;  %s1912_s2 = smov 127   ;;  %v573_v30 = vld [vmem:[%s2072_s9 + $0x8] sm:$0xff] }
  0x59   : > { %565 = vst.msk [vmem:[#allocation2 + $0x8] sm:$0xff] %vm563_vm0, %v556_v13  ;;  %s1509_s13 = sld [smem:[#allocation5 + $0x4]]  ;;  %v560_v42 = vld [vmem:[%s2070_s30 + $0x28] sm:$0xff]  ;;  %v559_v43 = vld [vmem:[%s2070_s30 + $0x20] sm:$0xff]  ;;  %v561_v51 = vld [vmem:[%s2070_s30 + $0x30] sm:$0xff]  ;;  %vm1057_vm1 = vcmask 130048  }
  0x5a   : > { %576 = vst.msk [vmem:[#allocation2 + $0x10] sm:$0xff] %vm563_vm0, %v572_v14  ;;  %s1510_s3 = sld [smem:[#allocation5 + $0x5]]  ;;  %v562_v58 = vld [vmem:[%s2070_s30 + $0x38] sm:$0xff]  ;;  %v574_v1 = vld [vmem:[%s2072_s9 + $0x10] sm:$0xff] }
  0x5b   : > { %567 = vst.msk [vmem:[#allocation2 + $0x20] sm:$0xff] %vm563_vm0, %v558_v15  ;;  %s1512_s15 = sld [smem:[#allocation5 + $0x7]]  ;;  %v575_v7 = vld [vmem:[%s2072_s9 + $0x18] sm:$0xff] }
  0x5c   : > { %566 = vst.msk [vmem:[#allocation2 + $0x18] sm:$0xff] %vm563_vm0, %v557_v16  ;;  %s1513_s18 = sld [smem:[#allocation5 + $0x8]] }
  0x5d   : > { %v607_v17 = vstv %s1507_s12  ;;  %577 = vst.msk [vmem:[#allocation2 + $0x28] sm:$0xff] %vm563_vm0, %v573_v30  ;;  %s1515_s19 = sld [smem:[#allocation5 + $0x81]] }
  0x5e   : > { %v594_v18 = vstv %s1506_s14  ;;  %s1516_s16 = sld [smem:[#allocation5 + $0x82]]  ;;  %569 = vst.msk [vmem:[#allocation2 + $0x38] sm:$0xff] %vm563_vm0, %v560_v42 }
  0x5f   : > { %v2096_v19 = vld [vmem:[#allocation2] sm:$0xff]  ;;  %v627_v23 = vstv %s1509_s13  ;;  %568 = vst.msk [vmem:[#allocation2 + $0x30] sm:$0xff] %vm563_vm0, %v559_v43  ;;  %s1518_s20 = sld [smem:[#allocation5 + $0x84]] }
  0x60   : > { %v608_v20 = vmul.f32 %v607_v17, %v2096_v19  ;;  %v595_v21 = vmul.f32 %v594_v18, %v2096_v19  ;;  %v2100_v22 = vld [vmem:[#allocation2 + $0x1] sm:$0xff]  ;;  %v640_v31 = vstv %s1510_s3  ;;  %570 = vst.msk [vmem:[#allocation2 + $0x48] sm:$0xff] %vm563_vm0, %v561_v51  ;;  %s1519_s27 = sld [smem:[#allocation5 + $0x85]] }
  0x61   : > { %v628_v24 = vmul.f32 %v627_v23, %v2100_v22  ;;  %v2105_v25 = vld [vmem:[#allocation2 + $0x8] sm:$0xff]  ;;  %v641_v33 = vmul.f32 %v640_v31, %v2100_v22  ;;  %v660_v35 = vstv %s1512_s15  ;;  %s1521_s28 = sld [smem:[#allocation5 + $0x87]]  ;;  %571 = vst.msk [vmem:[#allocation2 + $0x50] sm:$0xff] %vm563_vm0, %v562_v58 }
  0x62   : > { %612 = vrot.lane.b32.xlu1 %v608_v20, %s1911_s17  ;;  %599 = vrot.lane.b32.xlu0 %v595_v21, %s1912_s2  ;;  %v609_v26 = vmul.f32 %v607_v17, %v2105_v25  ;;  %v596_v27 = vmul.f32 %v594_v18, %v2105_v25  ;;  %v2110_v28 = vld [vmem:[#allocation2 + $0x9] sm:$0xff]  ;;  %v673_v37 = vstv %s1513_s18  ;;  %v2137_v44 = vld [vmem:[#allocation2 + $0x20] sm:$0xff]  ;;  %s1522_s12 = sld [smem:[#allocation5 + $0x88]]  ;;  %578 = vst.msk [vmem:[#allocation2 + $0x40] sm:$0xff] %vm563_vm0, %v574_v1 }
  0x63   : > { %632 = vrot.lane.b32.xlu2 %v628_v24, %s1912_s2  ;;  %v629_v29 = vmul.f32 %v627_v23, %v2110_v28  ;;  %v642_v32 = vmul.f32 %v640_v31, %v2110_v28  ;;  %v2120_v34 = vld [vmem:[#allocation2 + $0x2] sm:$0xff]  ;;  %v2125_v38 = vld [vmem:[#allocation2 + $0xa] sm:$0xff]  ;;  %v707_v45 = vstv %s1515_s19  ;;  %v2139_v46 = vld [vmem:[#allocation2 + $0x18] sm:$0xff]  ;;  %s1525_s30 = sld [smem:[#allocation5 + $0x101]]  ;;  %579 = vst.msk [vmem:[#allocation2 + $0x58] sm:$0xff] %vm563_vm0, %v575_v7 }
  0x64   : > { %v661_v36 = vmul.f32 %v660_v35, %v2120_v34  ;;  %v674_v39 = vmul.f32 %v673_v37, %v2120_v34  ;;  %v662_v40 = vmul.f32 %v660_v35, %v2125_v38  ;;  %v675_v41 = vmul.f32 %v673_v37, %v2125_v38  ;;  %v2149_v52 = vld [vmem:[#allocation2 + $0x19] sm:$0xff]  ;;  %v2154_v56 = vld [vmem:[#allocation2 + $0x21] sm:$0xff]  ;;  %s1526_s14 = sld [smem:[#allocation5 + $0x102]] }
  0x65   : > { %v709_v47 = vmul.f32 %v707_v45, %v2137_v44  ;;  %v708_v48 = vmul.f32 %v707_v45, %v2139_v46  ;;  %v720_v49 = vstv %s1516_s16  ;;  %v740_v53 = vstv %s1518_s20  ;;  %v2164_v62 = vld [vmem:[#allocation2 + $0x1a] sm:$0xff]  ;;  %v2171_v3 = vld [vmem:[#allocation2 + $0x22] sm:$0xff]  ;;  %s1535_s13 = sld [smem:[#allocation5 + $0x181]] }
  0x66   : > { %v721_v50 = vmul.f32 %v720_v49, %v2139_v46  ;;  %v741_v54 = vmul.f32 %v740_v53, %v2149_v52  ;;  %v722_v55 = vmul.f32 %v720_v49, %v2137_v44  ;;  %v742_v57 = vmul.f32 %v740_v53, %v2154_v56  ;;  %v2181_v8 = vld [vmem:[#allocation2 + $0x38] sm:$0xff]  ;;  %v2183_v10 = vld [vmem:[#allocation2 + $0x30] sm:$0xff]  ;;  %s1536_s9 = sld [smem:[#allocation5 + $0x182]] }
  0x67   : > { %v753_v59 = vstv %s1519_s27  ;;  %v773_v63 = vstv %s1521_s28  ;;  %v2191_v15 = vld [vmem:[#allocation2 + $0x48] sm:$0xff]  ;;  %s1528_s3 = sld [smem:[#allocation5 + $0x104]] }
  0x68   : > { %v755_v60 = vmul.f32 %v753_v59, %v2154_v56  ;;  %v754_v61 = vmul.f32 %v753_v59, %v2149_v52  ;;  %v774_v0 = vmul.f32 %v773_v63, %v2164_v62  ;;  %v786_v2 = vstv %s1522_s12  ;;  %v2196_v20 = vld [vmem:[#allocation2 + $0x50] sm:$0xff]  ;;  %s1529_s15 = sld [smem:[#allocation5 + $0x105]] }
  0x69   : > { %v787_v4 = vmul.f32 %v786_v2, %v2164_v62  ;;  %v775_v5 = vmul.f32 %v773_v63, %v2171_v3  ;;  %v788_v6 = vmul.f32 %v786_v2, %v2171_v3  ;;  %v820_v9 = vstv %s1525_s30  ;;  %s1538_s18 = sld [smem:[#allocation5 + $0x184]]  ;;  %v2234_v53 = vld [vmem:[#allocation2 + $0x3a] sm:$0xff] }
  0x6a   : > { %614 = vrot.lane.b32.xlu1 %v609_v26, %s1911_s17  ;;  %601 = vrot.lane.b32.xlu0 %v596_v27, %s1912_s2  ;;  %v822_v11 = vmul.f32 %v820_v9, %v2181_v8  ;;  %v821_v12 = vmul.f32 %v820_v9, %v2183_v10  ;;  %v833_v13 = vstv %s1526_s14  ;;  %v2204_v27 = vld [vmem:[#allocation2 + $0x31] sm:$0xff]  ;;  %s1539_s19 = sld [smem:[#allocation5 + $0x185]] }
  0x6b   : > { %634 = vrot.lane.b32.xlu2 %v629_v29, %s1912_s2  ;;  %v834_v14 = vmul.f32 %v833_v13, %v2183_v10  ;;  %v933_v16 = vstv %s1535_s13  ;;  %v835_v18 = vmul.f32 %v833_v13, %v2181_v8  ;;  %v2217_v37 = vld [vmem:[#allocation2 + $0x51] sm:$0xff]  ;;  %s1531_s16 = sld [smem:[#allocation5 + $0x107]] }
  0x6c   : > { %v934_v17 = vmul.f32 %v933_v16, %v2191_v15  ;;  %v935_v21 = vmul.f32 %v933_v16, %v2196_v20  ;;  %v946_v23 = vstv %s1536_s9  ;;  %s1532_s20 = sld [smem:[#allocation5 + $0x108]] }
  0x6d   : > { %v948_v24 = vmul.f32 %v946_v23, %v2196_v20  ;;  %v947_v26 = vmul.f32 %v946_v23, %v2191_v15  ;;  %v853_v29 = vstv %s1528_s3  ;;  %s2230_s27 = sld [smem:[#allocation5]] }
  0x6e   : > { %v854_v30 = vmul.f32 %v853_v29, %v2204_v27  ;;  %v866_v31 = vstv %s1529_s15  ;;  %s1541_s28 = sld [smem:[#allocation5 + $0x187]] }
  0x6f   : > { %s2237_s12 = sld [smem:[#allocation5 + $0x3]] }
  0x70   : > { %v979_v45 = vstv %s1539_s19  ;;  %s1542_s30 = sld [smem:[#allocation5 + $0x188]] }
  0x71   : > { %v886_v49 = vstv %s1531_s16  ;;  %v981_v51 = vmul.f32 %v979_v45, %v2217_v37  ;;  %s1511_s14 = sld [smem:[#allocation5 + $0x6]] }
  0x72   : > { %647 = vrot.lane.b32.xlu1 %v642_v32, %s1911_s17  ;;  %645 = vrot.lane.b32.xlu0 %v641_v33, %s1911_s17  ;;  %v2209_v32 = vld [vmem:[#allocation2 + $0x39] sm:$0xff]  ;;  %v867_v33 = vmul.f32 %v866_v31, %v2204_v27  ;;  %s2269_s13 = sld [smem:[#allocation8]] }
  0x73   : > { %665 = vrot.lane.b32.xlu2 %v661_v36, %s1912_s2  ;;  %v855_v35 = vmul.f32 %v853_v29, %v2209_v32  ;;  %v868_v36 = vmul.f32 %v866_v31, %v2209_v32  ;;  %s2271_s9 = sld [smem:[#allocation10]] }
  0x74   : > { %v999_v63 = vstv %s1541_s28  ;;  %s2275_s3 = sld [smem:[#allocation5 + $0x86]] }
  0x75   : > { %s2277_s15 = sld [smem:[#allocation10 + $0x80]] }
  0x76   : > { %s2281_s19 = sld [smem:[#allocation10 + $0x180]] }
  0x77   : > { %v655_v31 = vstv %s1511_s14  ;;  %s2284_s16 = sld [smem:[#allocation10 + $0x200]] }
  0x78   : > { %s2290_s28 = sld [smem:[#allocation10 + $0x380]] }
  0x79   : > { %s2297_s14 = sld [smem:[#allocation10 + $0x81]] }
  0x7a   : > { %678 = vrot.lane.b32.xlu1 %v674_v39, %s1911_s17  ;;  %667 = vrot.lane.b32.xlu0 %v662_v40, %s1912_s2  ;;  %v966_v39 = vstv %s1538_s18  ;;  %v2219_v40 = vld [vmem:[#allocation2 + $0x49] sm:$0xff]  ;;  %s2279_s18 = sld [smem:[#allocation10 + $0x100]] }
  0x7b   : > { %680 = vrot.lane.b32.xlu2 %v675_v41, %s1911_s17  ;;  %v968_v42 = vmul.f32 %v966_v39, %v2217_v37  ;;  %v967_v43 = vmul.f32 %v966_v39, %v2219_v40  ;;  %s2307_s0 = sld [smem:[#allocation10 + $0x281]] }
  0x7c   : > { %s2309_s1 = sld [smem:[#allocation10 + $0x301]] }
  0x7d   : > { %s2312_s4 = sld [smem:[#allocation10 + $0x381]] }
  0x7e   : > { %s2429_s5 = sld [smem:[#allocation10 + $0x183]] }
  0x7f   : > { %s2433_s29 = sld [smem:[#allocation10 + $0x203]] }
  0x80   : > { %s2435_s25 = sld [smem:[#allocation11 + $0x4]] }
  0x81   : > { %s2438_s10 = sld [smem:[#allocation10 + $0x283]] }
  0x82   : > { %714 = vrot.lane.b32.xlu1 %v709_v47, %s1912_s2  ;;  %712 = vrot.lane.b32.xlu0 %v708_v48, %s1912_s2  ;;  %v980_v47 = vmul.f32 %v979_v45, %v2219_v40  ;;  %v2227_v48 = vld [vmem:[#allocation2 + $0x32] sm:$0xff]  ;;  %s2441_s23 = sld [smem:[#allocation11 + $0x5]] }
  0x83   : > { %725 = vrot.lane.b32.xlu2 %v721_v50, %s1911_s17  ;;  %v887_v50 = vmul.f32 %v886_v49, %v2227_v48  ;;  %s2445_s22 = sld [smem:[#allocation10 + $0x303]] }
  0x84   : > { %s2448_s26 = sld [smem:[#allocation11 + $0x6]] }
  0x85   : > { %s2450_s11 = sld [smem:[#allocation10 + $0x383]] }
  0x8a   : > { %745 = vrot.lane.b32.xlu1 %v741_v54, %s1912_s2  ;;  %727 = vrot.lane.b32.xlu0 %v722_v55, %s1911_s17  ;;  %v888_v55 = vmul.f32 %v886_v49, %v2234_v53 }
  0x8b   : > { %747 = vrot.lane.b32.xlu2 %v742_v57, %s1912_s2  ;;  %v899_v57 = vstv %s1532_s20  ;;  %s2286_s20 = sld [smem:[#allocation10 + $0x280]] }
  0x8c   : > { %v901_v58 = vmul.f32 %v899_v57, %v2234_v53  ;;  %v900_v59 = vmul.f32 %v899_v57, %v2227_v48 }
  0x92   : > { %760 = vrot.lane.b32.xlu1 %v755_v60, %s1911_s17  ;;  %758 = vrot.lane.b32.xlu0 %v754_v61, %s1911_s17  ;;  %v591_v60 = vstv %s2230_s27  ;;  %v2245_v61 = vld [vmem:[#allocation2 + $0x4a] sm:$0xff]  ;;  %s2288_s27 = sld [smem:[#allocation10 + $0x300]] }
  0x93   : > { %778 = vrot.lane.b32.xlu2 %v774_v0, %s1912_s2  ;;  %v1000_v0 = vmul.f32 %v999_v63, %v2245_v61  ;;  %v592_v1 = vmul.f32 %v591_v60, %v2096_v19 }
  0x9a   : > { %791 = vrot.lane.b32.xlu1 %v787_v4, %s1911_s17  ;;  %780 = vrot.lane.b32.xlu0 %v775_v5, %s1912_s2  ;;  %v622_v4 = vstv %s2237_s12  ;;  %v1012_v5 = vstv %s1542_s30  ;;  %s2293_s12 = sld [smem:[#allocation8 + $0x1]] }
  0x9b   : > { %793 = vrot.lane.b32.xlu2 %v788_v6, %s1911_s17  ;;  %v2252_v6 = vld [vmem:[#allocation2 + $0x52] sm:$0xff]  ;;  %v1013_v13 = vmul.f32 %v1012_v5, %v2245_v61  ;;  %v624_v29 = vmul.f32 %v622_v4, %v2110_v28  ;;  %s2295_s30 = sld [smem:[#allocation10 + $0x1]] }
  0x9c   : > { %v1001_v19 = vmul.f32 %v999_v63, %v2252_v6  ;;  %v1014_v16 = vmul.f32 %v1012_v5, %v2252_v6 }
  0xa2   : > { %827 = vrot.lane.b32.xlu1 %v822_v11, %s1912_s2  ;;  %825 = vrot.lane.b32.xlu0 %v821_v12, %s1912_s2  ;;  %v623_v11 = vmul.f32 %v622_v4, %v2100_v22 }
  0xa3   : > { %838 = vrot.lane.b32.xlu2 %v834_v14, %s1911_s17 }
  0xaa   : > { %938 = vrot.lane.b32.xlu1 %v934_v17, %s1912_s2  ;;  %840 = vrot.lane.b32.xlu0 %v835_v18, %s1911_s17  ;;  %v593_v17 = vmul.f32 %v591_v60, %v2105_v25  ;;  %v656_v25 = vmul.f32 %v655_v31, %v2120_v34 }
  0xab   : > { %940 = vrot.lane.b32.xlu2 %v935_v21, %s1912_s2 }
  0xb2   : > { %953 = vrot.lane.b32.xlu1 %v948_v24, %s1911_s17  ;;  %951 = vrot.lane.b32.xlu0 %v947_v26, %s1911_s17 }
  0xb3   : > { %858 = vrot.lane.b32.xlu2 %v854_v30, %s1912_s2 }
  0xba   : > { %871 = vrot.lane.b32.xlu1 %v867_v33, %s1911_s17  ;;  %860 = vrot.lane.b32.xlu0 %v855_v35, %s1912_s2 }
  0xbb   : > { %873 = vrot.lane.b32.xlu2 %v868_v36, %s1911_s17 }
  0xbd   : > { %v633_v41 = vpop.permute.xlu2 %632 }
  0xc2   : > { %973 = vrot.lane.b32.xlu1 %v968_v42, %s1912_s2  ;;  %971 = vrot.lane.b32.xlu0 %v967_v43, %s1912_s2 }
  0xc3   : > { %984 = vrot.lane.b32.xlu2 %v980_v47, %s1911_s17  ;;  %v657_v47 = vmul.f32 %v655_v31, %v2125_v38  ;;  %v1090_v31 = vstv %s2279_s18  ;;  %s2384_s18 = sld [smem:[#allocation8 + $0x2]] }
  0xc5   : > { %v635_v54 = vpop.permute.xlu2 %634 }
  0xca   : > { %891 = vrot.lane.b32.xlu1 %v887_v50, %s1912_s2  ;;  %986 = vrot.lane.b32.xlu0 %v981_v51, %s1911_s17 }
  0xcb   : > { %893 = vrot.lane.b32.xlu2 %v888_v55, %s1912_s2 }
  0xcd   : > { %v666_v2 = vpop.permute.xlu2 %665 }
  0xd2   : > { %906 = vrot.lane.b32.xlu1 %v901_v58, %s1911_s17  ;;  %904 = vrot.lane.b32.xlu0 %v900_v59, %s1911_s17 }
  0xd3   : > { %1004 = vrot.lane.b32.xlu2 %v1000_v0, %s1912_s2 }
  0xd4   : > { %v613_v7 = vpop.permute.xlu1 %612  ;;  %v600_v9 = vpop.permute.xlu0 %599 }
  0xd5   : > { %v605_v12 = vadd.f32 %v600_v9, %v592_v1  ;;  %v681_v21 = vpop.permute.xlu2 %680 }
  0xd7   : > { %v618_v14 = vadd.f32 %v613_v7, %v605_v12 }
  0xd9   : > { %v625_v18 = vadd.f32 %v623_v11, %v618_v14 }
  0xda   : > { %1017 = vrot.lane.b32.xlu1 %v1013_v13, %s1911_s17  ;;  %1006 = vrot.lane.b32.xlu0 %v1001_v19, %s1912_s2  ;;  %s1514_s2 = sld [smem:[#allocation5 + $0x80]]  ;;  %v768_v19 = vstv %s2275_s3 }
  0xdb   : > { %v638_v23 = vadd.f32 %v633_v41, %v625_v18  ;;  %1019 = vrot.lane.b32.xlu2 %v1014_v16, %s1911_s17  ;;  %s1517_s17 = sld [smem:[#allocation5 + $0x83]]  ;;  %v769_v16 = vmul.f32 %v768_v19, %v2164_v62 }
  0xdc   : > { %v615_v22 = vpop.permute.xlu1 %614  ;;  %v602_v24 = vpop.permute.xlu0 %601  ;;  %s2305_s3 = sld [smem:[#allocation10 + $0x201]] }
  0xdd   : > { %v606_v26 = vadd.f32 %v602_v24, %v593_v17  ;;  %v726_v45 = vpop.permute.xlu2 %725  ;;  %v770_v24 = vmul.f32 %v768_v19, %v2171_v3  ;;  %v1235_v3 = vstv %s2290_s28  ;;  %s2399_s28 = sld [smem:[#allocation10 + $0x202]] }
  0xdf   : > { %v619_v30 = vadd.f32 %v615_v22, %v606_v26 }
  0xe0   : > { %v704_v58 = vstv %s1514_s2  ;;  %s2300_s2 = sld [smem:[#allocation10 + $0x101]] }
  0xe1   : > { %v626_v33 = vadd.f32 %v624_v29, %v619_v30  ;;  %v705_v59 = vmul.f32 %v704_v58, %v2139_v46  ;;  %v735_v0 = vstv %s1517_s17  ;;  %v706_v38 = vmul.f32 %v704_v58, %v2137_v44  ;;  %s2302_s17 = sld [smem:[#allocation10 + $0x181]] }
  0xe2   : > { %v737_v9 = vmul.f32 %v735_v0, %v2154_v56  ;;  %v1032_v29 = vstv %s2271_s9  ;;  %v1061_v30 = vstv %s2277_s15  ;;  %s2380_s9 = sld [smem:[#allocation5 + $0x106]] }
  0xe3   : > { %v639_v35 = vadd.f32 %v635_v54, %v626_v33  ;;  %v1119_v33 = vstv %s2281_s19  ;;  %s2382_s15 = sld [smem:[#allocation5 + $0x186]] }
  0xe4   : > { %v648_v36 = vpop.permute.xlu1 %647  ;;  %v646_v39 = vpop.permute.xlu0 %645  ;;  %s2386_s19 = sld [smem:[#allocation10 + $0x2]] }
  0xe5   : > { %v652_v42 = vadd.f32 %v648_v36, %v639_v35  ;;  %v651_v43 = vadd.f32 %v646_v39, %v638_v23  ;;  %v748_v34 = vpop.permute.xlu2 %747  ;;  %v1148_v35 = vstv %s2284_s16  ;;  %s2389_s16 = sld [smem:[#allocation10 + $0x82]] }
  0xe6   : > { %v1094_v58 = vstv %s2300_s2  ;;  %s2408_s2 = sld [smem:[#allocation8 + $0x3]] }
  0xe7   : > { %v658_v41 = vadd.f32 %v656_v25, %v651_v43  ;;  %v659_v50 = vadd.f32 %v657_v47, %v652_v42  ;;  %v1177_v25 = vstv %s2286_s20  ;;  %v1206_v42 = vstv %s2288_s27  ;;  %s2391_s20 = sld [smem:[#allocation10 + $0x102]] }
  0xe8   : > { %s2393_s27 = sld [smem:[#allocation10 + $0x182]] }
  0xe9   : > { %v671_v49 = vadd.f32 %v666_v2, %v658_v41  ;;  %v736_v2 = vmul.f32 %v735_v0, %v2149_v52 }
  0xec   : > { %v679_v51 = vpop.permute.xlu1 %678  ;;  %v668_v55 = vpop.permute.xlu0 %667 }
  0xed   : > { %v684_v28 = vadd.f32 %v679_v51, %v671_v49  ;;  %v672_v57 = vadd.f32 %v668_v55, %v659_v50  ;;  %v779_v5 = vpop.permute.xlu2 %778  ;;  %v1036_v50 = vstv %s2295_s30  ;;  %v1065_v51 = vstv %s2297_s14  ;;  %s2404_s30 = sld [smem:[#allocation10 + $0x302]] }
  0xee   : > { %s2406_s14 = sld [smem:[#allocation10 + $0x382]] }
  0xef   : > { %v2266_v54 = vadd.f32 %v681_v21, %v672_v57  ;;  %v687_v21 = vstv %s2269_s13  ;;  %s2378_s13 = sld [smem:[#allocation5 + $0x183]] }
  0xf0   : > { %v688_v26 = vadd.f32 %v687_v21, %v684_v28 }
  0xf1   : > { %v689_v57 = vadd.f32 %v687_v21, %v2266_v54 }
  0xf2   : > { %v690_v43 = vmax.f32 %v688_v26, 0.0 }
  0xf3   : > { %v691_v54 = vmax.f32 %v689_v57, 0.0 }
  0xf4   : > { %v715_v60 = vpop.permute.xlu1 %714  ;;  %v713_v63 = vpop.permute.xlu0 %712 }
  0xf5   : > { %v718_v1 = vadd.f32 %v713_v63, %v705_v59  ;;  %v719_v46 = vadd.f32 %v715_v60, %v706_v38  ;;  %v794_v56 = vpop.permute.xlu2 %793  ;;  %v1152_v59 = vstv %s2305_s3  ;;  %v1181_v60 = vstv %s2307_s0  ;;  %s1524_s0 = sld [smem:[#allocation5 + $0x100]] }
  0xf6   : > { %v1210_v63 = vstv %s2309_s1  ;;  %v1033_v38 = vmul.f32 %v1032_v29, %v690_v43  ;;  %s1527_s1 = sld [smem:[#allocation5 + $0x103]] }
  0xf7   : > { %v731_v4 = vadd.f32 %v726_v45, %v718_v1  ;;  %v800_v45 = vstv %s2293_s12  ;;  %s2401_s12 = sld [smem:[#allocation10 + $0x282]] }
  0xf8   : > { %s2414_s3 = sld [smem:[#allocation11]] }
  0xf9   : > { %v738_v7 = vadd.f32 %v736_v2, %v731_v4  ;;  %v1062_v2 = vmul.f32 %v1061_v30, %v690_v43  ;;  %v1091_v4 = vmul.f32 %v1090_v31, %v690_v43 }
  0xfc   : > { %v746_v44 = vpop.permute.xlu1 %745  ;;  %v728_v11 = vpop.permute.xlu0 %727 }
  0xfd   : > { %v751_v52 = vadd.f32 %v746_v44, %v738_v7  ;;  %v732_v12 = vadd.f32 %v728_v11, %v719_v46  ;;  %v2323_v49 = vpop.permute.xlu2 %838  ;;  %v1120_v46 = vmul.f32 %v1119_v33, %v690_v43  ;;  %v1149_v7 = vmul.f32 %v1148_v35, %v690_v43 }
  0xfe   : > { %v1207_v11 = vmul.f32 %v1206_v42, %v690_v43 }
  0xff   : > { %v739_v13 = vadd.f32 %v737_v9, %v732_v12  ;;  %v1178_v9 = vmul.f32 %v1177_v25, %v690_v43 }
 0x101   : > { %v752_v14 = vadd.f32 %v748_v34, %v739_v13  ;;  %v1123_v34 = vstv %s2302_s17  ;;  %s2411_s17 = sld [smem:[#allocation10 + $0x3]] }
 0x104   : > { %v761_v17 = vpop.permute.xlu1 %760  ;;  %v759_v18 = vpop.permute.xlu0 %758 }
 0x105   : > { %v765_v23 = vadd.f32 %v761_v17, %v752_v14  ;;  %v764_v22 = vadd.f32 %v759_v18, %v751_v52  ;;  %v1236_v52 = vmul.f32 %v1235_v3, %v690_v43  ;;  %v2352_v57 = vpop.permute.xlu2 %940 }
 0x107   : > { %v771_v62 = vadd.f32 %v769_v16, %v764_v22  ;;  %v772_v39 = vadd.f32 %v770_v24, %v765_v23 }
 0x109   : > { %v784_v36 = vadd.f32 %v779_v5, %v771_v62  ;;  %v1239_v5 = vstv %s2312_s4  ;;  %s2374_s4 = sld [smem:[#allocation5 + $0x180]] }
 0x10c   : > { %v792_v41 = vpop.permute.xlu1 %791  ;;  %v781_v47 = vpop.permute.xlu0 %780 }
 0x10d   : > { %v797_v55 = vadd.f32 %v792_v41, %v784_v36  ;;  %v785_v28 = vadd.f32 %v781_v47, %v772_v39  ;;  %v1034_v47 = vmul.f32 %v1032_v29, %v691_v54 }
 0x10f   : > { %v801_v0 = vadd.f32 %v800_v45, %v797_v55  ;;  %v798_v1 = vadd.f32 %v794_v56, %v785_v28  ;;  %v1063_v55 = vmul.f32 %v1061_v30, %v691_v54 }
 0x111   : > { %v803_v44 = vmax.f32 %v801_v0, 0.0  ;;  %v802_v12 = vadd.f32 %v800_v45, %v798_v1  ;;  %v1092_v0 = vmul.f32 %v1090_v31, %v691_v54  ;;  %v1121_v1 = vmul.f32 %v1119_v33, %v691_v54 }
 0x113   : > { %v1037_v13 = vmul.f32 %v1036_v50, %v803_v44  ;;  %v1066_v19 = vmul.f32 %v1065_v51, %v803_v44  ;;  %v1095_v14 = vmul.f32 %v1094_v58, %v803_v44  ;;  %v1124_v16 = vmul.f32 %v1123_v34, %v803_v44 }
 0x114   : > { %v1153_v17 = vmul.f32 %v1152_v59, %v803_v44  ;;  %v1182_v18 = vmul.f32 %v1181_v60, %v803_v44  ;;  %v1211_v56 = vmul.f32 %v1210_v63, %v803_v44  ;;  %v1240_v21 = vmul.f32 %v1239_v5, %v803_v44  ;;  %v828_v23 = vpop.permute.xlu1 %827  ;;  %v826_v22 = vpop.permute.xlu0 %825 }
 0x115   : > { %v2336_v62 = vadd.f32 %v1037_v13, %v1033_v38  ;;  %v2338_v24 = vadd.f32 %v1066_v19, %v1062_v2  ;;  %v2340_v26 = vadd.f32 %v1095_v14, %v1091_v4  ;;  %v2342_v36 = vadd.f32 %v1124_v16, %v1120_v46 }
 0x116   : > { %v2344_v39 = vadd.f32 %v1153_v17, %v1149_v7  ;;  %v2346_v43 = vadd.f32 %v1182_v18, %v1178_v9  ;;  %v2348_v45 = vadd.f32 %v1211_v56, %v1207_v11  ;;  %v2350_v41 = vadd.f32 %v1240_v21, %v1236_v52 }
 0x117   : > { %v804_v28 = vmax.f32 %v802_v12, 0.0  ;;  %v1150_v38 = vmul.f32 %v1148_v35, %v691_v54  ;;  %v1179_v2 = vmul.f32 %v1177_v25, %v691_v54  ;;  %v1208_v9 = vmul.f32 %v1206_v42, %v691_v54 }
 0x118   : > { %v1237_v42 = vmul.f32 %v1235_v3, %v691_v54  ;;  %v848_v56 = vstv %s1527_s1  ;;  %s2420_s1 = sld [smem:[#allocation11 + $0x1]] }
 0x119   : > { %v1038_v4 = vmul.f32 %v1036_v50, %v804_v28  ;;  %v1067_v46 = vmul.f32 %v1065_v51, %v804_v28  ;;  %v1096_v44 = vmul.f32 %v1094_v58, %v804_v28  ;;  %v1125_v7 = vmul.f32 %v1123_v34, %v804_v28  ;;  %v859_v34 = vpop.permute.xlu2 %858 }
 0x11a   : > { %v1154_v13 = vmul.f32 %v1152_v59, %v804_v28  ;;  %v1183_v11 = vmul.f32 %v1181_v60, %v804_v28  ;;  %v1212_v19 = vmul.f32 %v1210_v63, %v804_v28  ;;  %v1241_v52 = vmul.f32 %v1239_v5, %v804_v28 }
 0x11b   : > { %v2354_v14 = vadd.f32 %v1038_v4, %v1034_v47  ;;  %v2356_v29 = vadd.f32 %v1067_v46, %v1063_v55  ;;  %v2358_v30 = vadd.f32 %v1096_v44, %v1092_v0  ;;  %v2360_v35 = vadd.f32 %v1125_v7, %v1121_v1 }
 0x11c   : > { %v939_v31 = vpop.permute.xlu1 %938  ;;  %v841_v33 = vpop.permute.xlu0 %840  ;;  %v2362_v25 = vadd.f32 %v1154_v13, %v1150_v38  ;;  %v2364_v50 = vadd.f32 %v1183_v11, %v1179_v2  ;;  %v2366_v51 = vadd.f32 %v1212_v19, %v1208_v9  ;;  %v2370_v58 = vadd.f32 %v1241_v52, %v1237_v42 }
 0x11d   : > { %v817_v63 = vstv %s1524_s0  ;;  %v850_v21 = vmul.f32 %v848_v56, %v2209_v32  ;;  %v930_v32 = vstv %s2374_s4  ;;  %v881_v1 = vstv %s2380_s9  ;;  %s2417_s0 = sld [smem:[#allocation10 + $0x83]] }
 0x11e   : > { %v819_v5 = vmul.f32 %v817_v63, %v2181_v8  ;;  %v818_v16 = vmul.f32 %v817_v63, %v2183_v10  ;;  %v883_v2 = vmul.f32 %v881_v1, %v2234_v53  ;;  %v961_v46 = vstv %s2378_s13  ;;  %s2422_s4 = sld [smem:[#allocation10 + $0x103]] }
 0x11f   : > { %v882_v13 = vmul.f32 %v881_v1, %v2227_v48  ;;  %s2425_s9 = sld [smem:[#allocation11 + $0x2]]  ;;  %v932_v11 = vmul.f32 %v930_v32, %v2196_v20  ;;  %v962_v52 = vmul.f32 %v961_v46, %v2219_v40  ;;  %v963_v40 = vmul.f32 %v961_v46, %v2217_v37 }
 0x120   : > { %v832_v3 = vadd.f32 %v828_v23, %v819_v5  ;;  %v831_v54 = vadd.f32 %v826_v22, %v818_v16  ;;  %v849_v23 = vmul.f32 %v848_v56, %v2204_v27  ;;  %v931_v27 = vmul.f32 %v930_v32, %v2191_v15  ;;  %s2431_s13 = sld [smem:[#allocation11 + $0x3]] }
 0x121   : > { %v874_v12 = vpop.permute.xlu2 %873  ;;  %v945_v48 = vadd.f32 %v2352_v57, %v932_v11  ;;  %v994_v16 = vstv %s2382_s15  ;;  %s2456_s15 = sld [smem:[#allocation11 + $0x7]]  ;;  %v1048_v1 = vstv %s2411_s17  ;;  %v1135_v11 = vstv %s2429_s5 }
 0x122   : > { %v845_v8 = vadd.f32 %v841_v33, %v832_v3  ;;  %v844_v10 = vadd.f32 %v2323_v49, %v831_v54  ;;  %v944_v9 = vadd.f32 %v939_v31, %v931_v27  ;;  %v1071_v3 = vstv %s2389_s16  ;;  %s1601_s16 = sshll.u32 %s1893_s24, 7 }
 0x123   : > { %v1100_v54 = vstv %s2391_s20  ;;  %v1026_v27 = vstv %s2408_s2  ;;  %s1277_s24 = scalar_lea.hbm %s2645_s6, %s1601_s16 }
 0x124   : > { %v2372_v59 = vpop.permute.xlu1 %953  ;;  %v952_v60 = vpop.permute.xlu0 %951  ;;  %v852_v55 = vadd.f32 %v850_v21, %v845_v8  ;;  %v851_v49 = vadd.f32 %v849_v23, %v844_v10  ;;  %v1129_v21 = vstv %s2393_s27  ;;  %s1815_s27 = scalar_lea.hbm %s2645_s6, 256 }
 0x125   : > { %v957_v19 = vadd.f32 %v952_v60, %v944_v9  ;;  %v958_v5 = vadd.f32 %v2372_v59, %v945_v48  ;;  %v1042_v59 = vstv %s2386_s19 }
 0x126   : > { %v864_v4 = vadd.f32 %v859_v34, %v851_v49  ;;  %v1245_v49 = vstv %s2406_s14 }
 0x127   : > { %v964_v20 = vadd.f32 %v962_v52, %v957_v19  ;;  %v965_v56 = vadd.f32 %v963_v40, %v958_v5  ;;  %v1141_v19 = vstv %s2431_s13  ;;  %v1170_v52 = vstv %s2435_s25 }
 0x129   : > { %v985_v28 = vpop.permute.xlu2 %984 }
 0x12c   : > { %v872_v17 = vpop.permute.xlu1 %871  ;;  %v861_v18 = vpop.permute.xlu0 %860 }
 0x12d   : > { %v865_v0 = vadd.f32 %v861_v18, %v852_v55  ;;  %v877_v15 = vadd.f32 %v872_v17, %v864_v4  ;;  %v913_v17 = vstv %s2384_s18  ;;  %v995_v18 = vmul.f32 %v994_v16, %v2245_v61  ;;  %s1505_s18 = sshll.u32 %s2066_s7, 7 }
 0x12e   : > { %v1187_v55 = vstv %s2401_s12  ;;  %v1216_v61 = vstv %s2404_s30  ;;  %v1083_v4 = vstv %s2420_s1  ;;  %s2523_s19 = scalar_lea.vmem [#allocation13], %s1505_s18 }
 0x12f   : > { %v878_v38 = vadd.f32 %v874_v12, %v865_v0  ;;  %v884_v31 = vadd.f32 %v882_v13, %v877_v15  ;;  %v1112_v13 = vstv %s2425_s9 }
 0x131   : > { %v885_v53 = vadd.f32 %v883_v2, %v878_v38  ;;  %v894_v33 = vpop.permute.xlu2 %893  ;;  %v1054_v38 = vstv %s2414_s3  ;;  %v1077_v2 = vstv %s2417_s0 }
 0x133   : > { %v898_v42 = vadd.f32 %v894_v33, %v885_v53  ;;  %v1164_v53 = vstv %s2433_s29  ;;  %s1278_s29 = sshll.u32 %s2523_s19, 4  ;;  %s1279_s29 = int_to_ptr.vmem [resolvable:$true] %s1278_s29 }
 0x134   : > { %v2397_v47 = vpop.permute.xlu1 %973  ;;  %v972_v22 = vpop.permute.xlu0 %971 }
 0x135   : > { %v977_v12 = vadd.f32 %v972_v22, %v964_v20  ;;  %v1158_v22 = vstv %s2399_s28  ;;  %v978_v0 = vadd.f32 %v2397_v47, %v965_v56  ;;  %v1106_v47 = vstv %s2422_s4 }
 0x137   : > { %v990_v8 = vadd.f32 %v985_v28, %v977_v12  ;;  %v996_v28 = vmul.f32 %v994_v16, %v2252_v6  ;;  %v1193_v6 = vstv %s2438_s10  ;;  %s1280_s10 = sshll.u32 %s1277_s24, 4  ;;  %s1281_s10 = int_to_ptr.hbm [resolvable:$true] %s1280_s10 }
 0x138   : > { %s1809_s25 = sshra.s32 %s1281_s10, 4  ;;  %s1810_s25 = int_to_ptr.hbm [resolvable:$true] %s1809_s25 }
 0x139   : > { %v1005_v23 = vpop.permute.xlu2 %1004  ;;  %v997_v46 = vadd.f32 %v995_v18, %v990_v8  ;;  %p1816_p8 = scmp.lt.s32.totalorder %s1810_s25, %s2645_s6 }
 0x13c   : > { %v892_v44 = vpop.permute.xlu1 %891  ;;  %v987_v7 = vpop.permute.xlu0 %986 }
 0x13d   : > { %v897_v34 = vadd.f32 %v892_v44, %v884_v31  ;;  %v991_v44 = vadd.f32 %v987_v7, %v978_v0  ;;  %v1222_v31 = vstv %s2445_s22 }
 0x13f   : > { %v998_v7 = vadd.f32 %v996_v28, %v991_v44 }
 0x144   : > { %v907_v60 = vpop.permute.xlu1 %906  ;;  %v905_v63 = vpop.permute.xlu0 %904 }
 0x145   : > { %v911_v57 = vadd.f32 %v907_v60, %v898_v42  ;;  %v910_v37 = vadd.f32 %v905_v63, %v897_v34  ;;  %v1251_v42 = vstv %s2450_s11  ;;  %v1010_v60 = vadd.f32 %v1005_v23, %v997_v46  ;;  %s1811_s11 = scalar_lea.hbm %s1810_s25, 128 }
 0x146   : > { %p1812_p4 = scmp.ne.s32.totalorder %s1810_s25, %s1811_s11  ;;  %p1817_p9 = scmp.lt.s32.totalorder %s1815_s27, %s1811_s11 }
 0x147   : > { %v915_v10 = vadd.f32 %v913_v17, %v911_v57  ;;  %v914_v32 = vadd.f32 %v913_v17, %v910_v37  ;;  %v1020_v37 = vpop.permute.xlu2 %1019 }
 0x148   : > { %p1813_p6 = pnand %p1812_p4, %p1993_p5  ;;  %p1818_p10 = por %p1817_p9, %p1816_p8 }
 0x149   : > { %v917_v9 = vmax.f32 %v915_v10, 0.0  ;;  %v916_v15 = vmax.f32 %v914_v32, 0.0 }
 0x14a   : > { %p1814_p7 = pneg %p1813_p6 }
 0x14b   : > { %v1044_v63 = vmul.f32 %v1042_v59, %v917_v9  ;;  %v1073_v5 = vmul.f32 %v1071_v3, %v917_v9  ;;  %v1102_v12 = vmul.f32 %v1100_v54, %v917_v9  ;;  %v1043_v16 = vmul.f32 %v1042_v59, %v916_v15 }
 0x14c   : > { %v1018_v40 = vpop.permute.xlu1 %1017  ;;  %v1007_v34 = vpop.permute.xlu0 %1006  ;;  %v1072_v57 = vmul.f32 %v1071_v3, %v916_v15  ;;  %v1101_v17 = vmul.f32 %v1100_v54, %v916_v15  ;;  %v1130_v18 = vmul.f32 %v1129_v21, %v916_v15  ;;  %v1159_v56 = vmul.f32 %v1158_v22, %v916_v15  ;;  %p1819_p12 = pnand %p1818_p10, %p1814_p7 }
 0x14d   : > { %v1023_v8 = vadd.f32 %v1018_v40, %v1010_v60  ;;  %v1011_v10 = vadd.f32 %v1007_v34, %v998_v7  ;;  %v1131_v32 = vmul.f32 %v1129_v21, %v917_v9  ;;  %v1188_v0 = vmul.f32 %v1187_v55, %v916_v15 }
 0x14e   : > { %v1217_v48 = vmul.f32 %v1216_v61, %v916_v15  ;;  %v1246_v33 = vmul.f32 %v1245_v49, %v916_v15  ;;  %v1160_v20 = vmul.f32 %v1158_v22, %v917_v9  ;;  %v1189_v23 = vmul.f32 %v1187_v55, %v917_v9 }
 0x14f   : > { %v1027_v46 = vadd.f32 %v1026_v27, %v1023_v8  ;;  %v1024_v28 = vadd.f32 %v1020_v37, %v1011_v10  ;;  %v1218_v59 = vmul.f32 %v1216_v61, %v917_v9  ;;  %v2482_v3 = vmul.f32 %v1245_v49, %v917_v9 }
 0x150   : > { %v1045_v54 = vadd.f32 %v1043_v16, %v2336_v62  ;;  %v1074_v21 = vadd.f32 %v1072_v57, %v2338_v24  ;;  %v1103_v22 = vadd.f32 %v1101_v17, %v2340_v26  ;;  %v1132_v55 = vadd.f32 %v1130_v18, %v2342_v36 }
 0x151   : > { %v1161_v44 = vadd.f32 %v1159_v56, %v2344_v39  ;;  %v1029_v15 = vmax.f32 %v1027_v46, 0.0  ;;  %v1190_v61 = vadd.f32 %v1188_v0, %v2346_v43  ;;  %v1219_v49 = vadd.f32 %v1217_v48, %v2348_v45 }
 0x152   : > { %v1248_v9 = vadd.f32 %v1246_v33, %v2350_v41  ;;  %v1028_v40 = vadd.f32 %v1026_v27, %v1024_v28  ;;  %v1046_v17 = vadd.f32 %v1044_v63, %v2354_v14  ;;  %v1075_v8 = vadd.f32 %v1073_v5, %v2356_v29 }
 0x153   : > { %v1049_v62 = vmul.f32 %v1048_v1, %v1029_v15  ;;  %v1078_v24 = vmul.f32 %v1077_v2, %v1029_v15  ;;  %v1107_v26 = vmul.f32 %v1106_v47, %v1029_v15  ;;  %v1136_v36 = vmul.f32 %v1135_v11, %v1029_v15 }
 0x154   : > { %v1165_v39 = vmul.f32 %v1164_v53, %v1029_v15  ;;  %v1194_v43 = vmul.f32 %v1193_v6, %v1029_v15  ;;  %v1223_v45 = vmul.f32 %v1222_v31, %v1029_v15  ;;  %v1252_v41 = vmul.f32 %v1251_v42, %v1029_v15 }
 0x155   : > { %v1051_v27 = vadd.f32 %v1049_v62, %v1045_v54  ;;  %v1080_v33 = vadd.f32 %v1078_v24, %v1074_v21  ;;  %v1109_v48 = vadd.f32 %v1107_v26, %v1103_v22  ;;  %v1138_v34 = vadd.f32 %v1136_v36, %v1132_v55 }
 0x156   : > { %v1167_v60 = vadd.f32 %v1165_v39, %v1161_v44  ;;  %v1196_v7 = vadd.f32 %v1194_v43, %v1190_v61  ;;  %v1225_v16 = vadd.f32 %v1223_v45, %v1219_v49  ;;  %v1254_v57 = vadd.f32 %v1252_v41, %v1248_v9 }
 0x157   : > { %v1055_v37 = vadd.f32 %v1054_v38, %v1051_v27  ;;  %v1084_v18 = vadd.f32 %v1083_v4, %v1080_v33  ;;  %v1113_v56 = vadd.f32 %v1112_v13, %v1109_v48  ;;  %v1104_v10 = vadd.f32 %v1102_v12, %v2358_v30 }
 0x158   : > { %v1133_v0 = vadd.f32 %v1131_v32, %v2360_v35  ;;  %v1142_v14 = vadd.f32 %v1141_v19, %v1138_v34  ;;  %v1162_v63 = vadd.f32 %v1160_v20, %v2362_v25  ;;  %v1191_v46 = vadd.f32 %v1189_v23, %v2364_v50 }
 0x159   : > { %1058 = vst.msk [vmem:[%s2523_s19] sm:$0xff] %vm1057_vm1, %v1055_v37  ;;  %v1171_v29 = vadd.f32 %v1170_v52, %v1167_v60  ;;  %v1030_v30 = vmax.f32 %v1028_v40, 0.0  ;;  %v1220_v35 = vadd.f32 %v1218_v59, %v2366_v51  ;;  %v2678_v25 = vstv %s2441_s23  ;;  %s1264_s23 = scalar_lea.sflag [#allocation6], %s2066_s7 }
 0x15a   : > { %1552 = vst.msk [vmem:[%s2523_s19 + $0x10] sm:$0xff] %vm1057_vm1, %v1084_v18  ;;  %v1200_v50 = vadd.f32 %v2678_v25, %v1196_v7  ;;  %v2679_v20 = vstv %s2448_s26  ;;  %v2680_v12 = vstv %s2456_s15 }
 0x15b   : > { %v1229_v5 = vadd.f32 %v2679_v20, %v1225_v16  ;;  %v1258_v32 = vadd.f32 %v2680_v12, %v1254_v57  ;;  %1559 = vst.msk [vmem:[%s2523_s19 + $0x20] sm:$0xff] %vm1057_vm1, %v1113_v56  ;;  %v1050_v23 = vmul.f32 %v1048_v1, %v1030_v30  ;;  %v1079_v28 = vmul.f32 %v1077_v2, %v1030_v30 }
 0x15c   : > { %v1108_v54 = vmul.f32 %v1106_v47, %v1030_v30  ;;  %v1137_v51 = vmul.f32 %v1135_v11, %v1030_v30  ;;  %1566 = vst.msk [vmem:[%s2523_s19 + $0x30] sm:$0xff] %vm1057_vm1, %v1142_v14  ;;  %v1166_v59 = vmul.f32 %v1164_v53, %v1030_v30  ;;  %v1195_v21 = vmul.f32 %v1193_v6, %v1030_v30 }
 0x15d   : > { %v1224_v22 = vmul.f32 %v1222_v31, %v1030_v30  ;;  %v1253_v1 = vmul.f32 %v1251_v42, %v1030_v30  ;;  %1573 = vst.msk [vmem:[%s2523_s19 + $0x40] sm:$0xff] %vm1057_vm1, %v1171_v29  ;;  %v1052_v2 = vadd.f32 %v1050_v23, %v1046_v17  ;;  %v1081_v47 = vadd.f32 %v1079_v28, %v1075_v8 }
 0x15e   : > { %v1110_v11 = vadd.f32 %v1108_v54, %v1104_v10  ;;  %v1139_v55 = vadd.f32 %v1137_v51, %v1133_v0  ;;  %v1249_v53 = vadd.f32 %v2482_v3, %v2370_v58  ;;  %1580 = vst.msk [vmem:[%s2523_s19 + $0x50] sm:$0xff] %vm1057_vm1, %v1200_v50  ;;  %v1168_v6 = vadd.f32 %v1166_v59, %v1162_v63 }
 0x15f   : > { %v1197_v31 = vadd.f32 %v1195_v21, %v1191_v46  ;;  %1587 = vst.msk [vmem:[%s2523_s19 + $0x60] sm:$0xff] %vm1057_vm1, %v1229_v5  ;;  %v1056_v42 = vadd.f32 %v1054_v38, %v1052_v2  ;;  %v1085_v44 = vadd.f32 %v1083_v4, %v1081_v47  ;;  %v1226_v58 = vadd.f32 %v1224_v22, %v1220_v35 }
 0x160   : > { %v1114_v15 = vadd.f32 %v1112_v13, %v1110_v11  ;;  %1594 = vst.msk [vmem:[%s2523_s19 + $0x70] sm:$0xff] %vm1057_vm1, %v1258_v32  ;;  %v1143_v3 = vadd.f32 %v1141_v19, %v1139_v55  ;;  %v1255_v61 = vadd.f32 %v1253_v1, %v1249_v53  ;;  %v1172_v38 = vadd.f32 %v1170_v52, %v1168_v6 }
 0x161   : > { %1059 = vst.msk [vmem:[%s2523_s19 + $0x8] sm:$0xff] %vm1057_vm1, %v1056_v42  ;;  %v2681_v4 = vmov %v2678_v25  ;;  %v2682_v49 = vmov %v2679_v20  ;;  %v2683_v19 = vmov %v2680_v12 }
 0x162   : > { %1553 = vst.msk [vmem:[%s2523_s19 + $0x18] sm:$0xff] %vm1057_vm1, %v1085_v44  ;;  %v1201_v13 = vadd.f32 %v2681_v4, %v1197_v31  ;;  %v1230_v9 = vadd.f32 %v2682_v49, %v1226_v58  ;;  %v1259_v40 = vadd.f32 %v2683_v19, %v1255_v61 }
 0x163   : > { %1560 = vst.msk [vmem:[%s2523_s19 + $0x28] sm:$0xff] %vm1057_vm1, %v1114_v15 }
 0x164   : > { %1567 = vst.msk [vmem:[%s2523_s19 + $0x38] sm:$0xff] %vm1057_vm1, %v1143_v3 }
 0x165   : > { %1574 = vst.msk [vmem:[%s2523_s19 + $0x48] sm:$0xff] %vm1057_vm1, %v1172_v38 }
 0x166   : > { %1581 = vst.msk [vmem:[%s2523_s19 + $0x58] sm:$0xff] %vm1057_vm1, %v1201_v13 }
 0x167   : > { %1588 = vst.msk [vmem:[%s2523_s19 + $0x68] sm:$0xff] %vm1057_vm1, %v1230_v9 }
 0x168   : > { %1595 = vst.msk [vmem:[%s2523_s19 + $0x78] sm:$0xff] %vm1057_vm1, %v1259_v40 }
 0x169   : > { %1822 = shalt.err (!%p1819_p12)
}
 0x16a   : > { %s1913_s7 = smov 128   ;;  %s1914_s30 = smov 8  }
 0x16b   : > { %1619 = dma.vmem_to_hbm [thread:$0]  (%p1993_p5), %s1279_s29, 2048, %s1281_s10, %s1264_s23, %s1913_s7, %s1913_s7, %s1914_s30  }
 0x16c PF: > { %s2685_s2 = sld [smem:[#allocation21_spill]]  ;;  %s1295_s17 = sand.u32 1, %s1881_s21  }
 0x16d   : > { %p1635_p13 = pnand %p1481_p2, %p2006_p11  ;;  %s1296_s3 = scalar_lea.sflag [#allocation6], %s1295_s17 }
 0x16f   : > { %p1636_p0 = pneg %p1635_p13 }
 0x171   : > { %1876 = dma.done.wait (%p1636_p0), %s1296_s3, 2048  }
 0x172   : > { %1878 = vsyncadd (%p1636_p0), %s1296_s3, 4294965248  ;;  %s22_s26 = sadd.s32 1, %s2685_s2   ;;  %s2686_s21 = sld [smem:[#allocation18_spill]] }
 0x173   : > { %p19_p1 = scmp.ge.s32.totalorder %s22_s26, 4   ;;  %s2687_s22 = sld [smem:[#allocation19_spill]] }
 0x174   : > { %s2688_s23 = sld [smem:[#allocation23_spill]] }
 0x175   : > { %s2689_s24 = sld [smem:[#allocation20_spill]]  ;;  %21 = sbr.rel (!%p19_p1) target bundleno = 14 (0xe), region = 239 }
 0x176   : > { %s2690_s25 = sld [smem:[#allocation22_spill]] }
 0x17a   :  { %1302 = vsyncpa [#allocation6], 1 }
 0x17b   :  { %1304 = vsyncpa [#allocation6 + $0x1], 1 }
 0x17c   :  { %1305 = vsyncpa [#allocation7], 1 }
 0x17d   :  { %1307 = vsyncpa [#allocation7 + $0x1], 1 }
 0x17e   :  { %1308 = vsyncpa [#allocation9], 1 }
 0x17f   :  { %1309 = vsyncpa [#allocation12], 1 }

</bundles_post_ra>
